<compile_context>
chip_gen: v7x
topology: tpu7x:2x2x1
jax: 0.10.0
libtpu: 0.0.40
codegen_flags: <defaults>
</compile_context>

<pallas_src>
import functools
import math

import jax
import jax.numpy as jnp
from jax.experimental import pallas as pl
from jax.experimental.pallas import tpu as pltpu


# ----------------------------------------------------------------------------- helpers
def _layernorm(x, scale, shift, eps=1e-5):
    x = x.astype(jnp.float32)
    mean = jnp.mean(x, axis=-1, keepdims=True)
    var = jnp.mean((x - mean) ** 2, axis=-1, keepdims=True)   # unbiased=False (torch)
    return scale * ((x - mean) / jnp.sqrt(var + eps)) + shift


def _pick_tile(n, target, granularity=8):
    """Largest divisor of n that is <= target and a multiple of `granularity`.
    Falls back to n itself (single tile) for short / odd lengths.
    # TODO(synk): padding T to a tile multiple would keep the tiled path for odd lengths.
    """
    if n <= target:
        return n
    for d in range(min(target, n), 0, -1):
        if n % d == 0 and d % granularity == 0:
            return d
    return n


def _vmem_capacity_bytes():
    try:
        return int(pltpu.get_tpu_info().vmem_capacity_bytes)
    except Exception:
        return 64 * 2**20          # conservative default that fits every TPU generation


def _const_spec(shape, single_buffer):
    """BlockSpec for a weight that is identical for every grid step."""
    zeros = (0,) * len(shape)
    idx = lambda b, t, _z=zeros: _z
    if single_buffer:
        # constant index map -> one resident buffer is enough (halves weight VMEM).
        return pl.BlockSpec(shape, idx, pipeline_mode=pl.Buffered(1))
    return pl.BlockSpec(shape, idx)


def _call_with_fallback(build, args):
    """Try the single-buffered-weights variant; fall back if this jax version rejects it."""
    try:
        return build(True)(*args)
    except Exception:
        return build(False)(*args)


# ----------------------------------------------------------------------------- kernels
def _qkv_kernel(x_ref, wqkv_ref, ln1s_ref, ln1b_ref, q_ref, k_ref, v_ref, *, mm_dtype):
    """LayerNorm1 + fused QKV projection for one (batch, token-tile) block."""
    x = x_ref[0]                                        # (TT, D)
    D = x.shape[1]
    xn = _layernorm(x, ln1s_ref[...], ln1b_ref[...])
    qkv = jnp.dot(xn.astype(mm_dtype), wqkv_ref[...],
                  preferred_element_type=jnp.float32)   # (TT, 3D), f32 accumulation
    q_ref[0] = qkv[:, :D].astype(q_ref.dtype)           # 1/sqrt(hd) already folded into Wq
    k_ref[0] = qkv[:, D:2 * D].astype(k_ref.dtype)
    v_ref[0] = qkv[:, 2 * D:].astype(v_ref.dtype)


def _block_kernel(x_ref, q_ref, k_ref, v_ref, wo_ref, bo_ref,
                  w1_ref, b1_ref, w2_ref, b2_ref, ln2s_ref, ln2b_ref,
                  out_ref, *, num_heads, kv_tile, ff_chunk, mm_dtype):
    """Causal attention (online softmax over KV tiles) + out-proj + LN2 + FFN, one q tile."""
    TQ, D = x_ref.shape[1], x_ref.shape[2]
    hd = D // num_heads
    q_start = pl.multiple_of(pl.program_id(1) * TQ, TQ)

    # ---- attention: flash-style loop over KV tiles (skips fully-masked tiles) ----
    qh = q_ref[0].reshape(TQ, num_heads, hd).swapaxes(0, 1)          # (H, TQ, hd)
    row = q_start + jax.lax.broadcasted_iota(jnp.int32, (TQ, kv_tile), 0)
    n_kv = pl.cdiv(q_start + TQ, kv_tile)         # causal: only tiles up to the q-tile end

    def kv_step(j, carry):
        m, l, acc = carry                                            # (H,TQ) (H,TQ) (H,TQ,hd)
        start = pl.multiple_of(j * kv_tile, kv_tile)
        kt = k_ref[0, pl.ds(start, kv_tile), :].reshape(kv_tile, num_heads, hd).swapaxes(0, 1)
        vt = v_ref[0, pl.ds(start, kv_tile), :].reshape(kv_tile, num_heads, hd).swapaxes(0, 1)
        s = jnp.einsum('hqd,hkd->hqk', qh, kt,
                       preferred_element_type=jnp.float32)           # (H, TQ, kv_tile)
        col = start + jax.lax.broadcasted_iota(jnp.int32, (TQ, kv_tile), 1)
        s = jnp.where((col > row)[None], -jnp.inf, s)
        m_new = jnp.maximum(m, s.max(axis=-1))
        alpha = jnp.exp(m - m_new)
        p = jnp.exp(s - m_new[..., None])
        l_new = alpha * l + p.sum(axis=-1)
        acc_new = alpha[..., None] * acc + jnp.einsum(
            'hqk,hkd->hqd', p.astype(mm_dtype), vt, preferred_element_type=jnp.float32)
        return m_new, l_new, acc_new

    m0 = jnp.full((num_heads, TQ), -jnp.inf, jnp.float32)
    l0 = jnp.zeros((num_heads, TQ), jnp.float32)
    a0 = jnp.zeros((num_heads, TQ, hd), jnp.float32)
    _, l, acc = jax.lax.fori_loop(0, n_kv, kv_step, (m0, l0, a0))
    ctx = acc / l[..., None]                                         # (H, TQ, hd)

    # ---- per-head fused output projection: sum_h ctx[h] @ Wo[h] (no head transpose) ----
    att = jnp.zeros((TQ, D), jnp.float32)
    for h in range(num_heads):
        att = att + jnp.dot(ctx[h].astype(mm_dtype), wo_ref[h],
                            preferred_element_type=jnp.float32)
    x1 = x_ref[0] + att + bo_ref[...]                                # residual 1

    # ---- LayerNorm 2 + FeedForward (Linear -> exact GELU -> Linear), hidden-dim chunks ----
    xn2 = _layernorm(x1, ln2s_ref[...], ln2b_ref[...]).astype(mm_dtype)
    n_ff = w1_ref.shape[1] // ff_chunk

    def ff_step(c, acc2):
        off = pl.multiple_of(c * ff_chunk, ff_chunk)
        h1 = jnp.dot(xn2, w1_ref[:, pl.ds(off, ff_chunk)],
                     preferred_element_type=jnp.float32) + b1_ref[:, pl.ds(off, ff_chunk)]
        # torch nn.GELU() default = exact erf form (tanh-approx would move work to the EUP
        # but deviates from torch numerics).
        g = 0.5 * h1 * (1.0 + jax.lax.erf(h1 * (1.0 / math.sqrt(2.0))))
        return acc2 + jnp.dot(g.astype(mm_dtype), w2_ref[pl.ds(off, ff_chunk), :],
                              preferred_element_type=jnp.float32)

    ff = jax.lax.fori_loop(0, n_ff, ff_step, jnp.zeros((TQ, D), jnp.float32))
    out_ref[0] = (x1 + ff + b2_ref[...]).astype(out_ref.dtype)       # residual 2


# ----------------------------------------------------------------------------- wrapper
def transformer_block(x, params, num_heads, *, q_tile=None, kv_tile=None,
                      ff_chunk=None, mm_dtype=None):
    (wq, wk, wv, wo, bo, w1, b1, w2, b2, l1s, l1b, l2s, l2b) = params
    B, T, D = x.shape
    Hff = w1.shape[1]
    hd = D // num_heads

    if mm_dtype is None:
        mm_dtype = jnp.bfloat16     # bf16 MXU operands on v5e/v6e/v7x, f32 accumulation
    cap = _vmem_capacity_bytes()
    vmem_limit = max(32 * 2**20, int(cap * 0.85))   # ~108 MiB on v5e/v6e, ~54 MiB on v7x

    q_tile = _pick_tile(T, (256 if cap >= 96 * 2**20 else 128) if q_tile is None else q_tile)
    kv_tile = _pick_tile(T, 512 if kv_tile is None else kv_tile)
    ff_chunk = _pick_tile(Hff, 1024 if ff_chunk is None else ff_chunk, granularity=128)
    t_tile = _pick_tile(T, 256)

    # Fold 1/sqrt(hd) into the Q columns, fuse [Wq|Wk|Wv], reshape Wo per head,
    # cast matmul weights to the MXU compute dtype (halves their HBM/VMEM footprint).
    scale = 1.0 / math.sqrt(hd)
    wqkv = jnp.concatenate([wq * scale, wk, wv], axis=1).astype(mm_dtype)
    wo_h = wo.reshape(num_heads, hd, D).astype(mm_dtype)
    w1c = w1.astype(mm_dtype)
    w2c = w2.astype(mm_dtype)

    n_t = T // t_tile
    n_q = T // q_tile

    # ---------------- stage 1: LayerNorm1 + fused QKV (once per token) ----------------
    def build_qkv(single_buffer):
        kernel = functools.partial(_qkv_kernel, mm_dtype=mm_dtype)
        tok_in = pl.BlockSpec((1, t_tile, D), lambda b, ti: (b, ti, 0))
        tok_out = pl.BlockSpec((1, t_tile, D), lambda b, ti: (b, ti, 0))
        return pl.pallas_call(
            kernel,
            out_shape=(jax.ShapeDtypeStruct((B, T, D), mm_dtype),) * 3,
            grid=(B, n_t),
            in_specs=[tok_in,
                      _const_spec((D, 3 * D), single_buffer),
                      _const_spec((1, D), single_buffer),
                      _const_spec((1, D), single_buffer)],
            out_specs=(tok_out, tok_out, tok_out),
            compiler_params=pltpu.CompilerParams(
                dimension_semantics=("parallel", "parallel"),
                vmem_limit_bytes=vmem_limit))

    q, k, v = _call_with_fallback(build_qkv, (x, wqkv, l1s, l1b))

    # ---------------- stage 2: attention + out-proj + LN2 + FFN -----------------------
    def build_block(single_buffer):
        kernel = functools.partial(_block_kernel, num_heads=num_heads, kv_tile=kv_tile,
                                   ff_chunk=ff_chunk, mm_dtype=mm_dtype)
        q_spec = pl.BlockSpec((1, q_tile, D), lambda b, qi: (b, qi, 0))
        seq_spec = pl.BlockSpec((1, T, D), lambda b, qi: (b, 0, 0))   # DMA'd once per b
        in_specs = [
            q_spec,                                            # x tile (residual input)
            q_spec,                                            # q tile
            seq_spec,                                          # k (full sequence)
            seq_spec,                                          # v (full sequence)
            _const_spec((num_heads, hd, D), single_buffer),    # Wo per head
            _const_spec((1, D), single_buffer),                # bo
            _const_spec((D, Hff), single_buffer),              # FF W1
            _const_spec((1, Hff), single_buffer),              # FF b1
            _const_spec((Hff, D), single_buffer),              # FF W2
            _const_spec((1, D), single_buffer),                # FF b2
            _const_spec((1, D), single_buffer),                # ln2 scale
            _const_spec((1, D), single_buffer),                # ln2 shift
        ]
        return pl.pallas_call(
            kernel,
            out_shape=jax.ShapeDtypeStruct((B, T, D), x.dtype),
            grid=(B, n_q),
            in_specs=in_specs,
            out_specs=pl.BlockSpec((1, q_tile, D), lambda b, qi: (b, qi, 0)),
            compiler_params=pltpu.CompilerParams(
                dimension_semantics=("parallel", "parallel"),
                vmem_limit_bytes=vmem_limit))

    return _call_with_fallback(
        build_block, (x, q, k, v, wo_h, bo, w1c, b1, w2c, b2, l2s, l2b))


# ----------------------------------------------------------------------------- reference
def _reference(x, params, num_heads):
    (wq, wk, wv, wo, bo, w1, b1, w2, b2, l1s, l1b, l2s, l2b) = params
    B, T, D = x.shape
    hd = D // num_heads

    def ln(z, s, b):
        m = z.mean(-1, keepdims=True)
        v = ((z - m) ** 2).mean(-1, keepdims=True)
        return s * (z - m) / jnp.sqrt(v + 1e-5) + b

    xn = ln(x, l1s, l1b)
    q = (xn @ wq).reshape(B, T, num_heads, hd).transpose(0, 2, 1, 3)
    k = (xn @ wk).reshape(B, T, num_heads, hd).transpose(0, 2, 1, 3)
    v = (xn @ wv).reshape(B, T, num_heads, hd).transpose(0, 2, 1, 3)
    s = jnp.einsum("bhqd,bhkd->bhqk", q, k) / math.sqrt(hd)
    mask = jnp.triu(jnp.ones((T, T), bool), 1)
    s = jnp.where(mask, -jnp.inf, s)
    w = jax.nn.softmax(s, axis=-1)
    ctx = jnp.einsum("bhqk,bhkd->bhqd", w, v).transpose(0, 2, 1, 3).reshape(B, T, D)
    x1 = x + (ctx @ wo + bo)
    xn2 = ln(x1, l2s, l2b)
    h1 = xn2 @ w1 + b1
    g = 0.5 * h1 * (1.0 + jax.lax.erf(h1 / jnp.sqrt(2.0)))
    return x1 + (g @ w2 + b2)


def _make_params(key, D, H):
    ks = jax.random.split(key, 8)
    wq = 0.05 * jax.random.normal(ks[1], (D, D), jnp.float32)
    wk = 0.05 * jax.random.normal(ks[2], (D, D), jnp.float32)
    wv = 0.05 * jax.random.normal(ks[3], (D, D), jnp.float32)
    wo = 0.05 * jax.random.normal(ks[4], (D, D), jnp.float32)
    bo = 0.01 * jnp.arange(D, dtype=jnp.float32).reshape(1, D)
    w1 = 0.05 * jax.random.normal(ks[5], (D, H), jnp.float32)
    b1 = 0.01 * jnp.arange(H, dtype=jnp.float32).reshape(1, H)
    w2 = 0.05 * jax.random.normal(ks[6], (H, D), jnp.float32)
    b2 = 0.01 * jnp.arange(D, dtype=jnp.float32).reshape(1, D)
    l1s = jnp.ones((1, D), jnp.float32)
    l1b = jnp.zeros((1, D), jnp.float32)
    l2s = jnp.ones((1, D), jnp.float32)
    l2b = jnp.zeros((1, D), jnp.float32)
    return (wq, wk, wv, wo, bo, w1, b1, w2, b2, l1s, l1b, l2s, l2b)


if __name__ == "__main__":
    # cfg: emb_dim=32, context_length=8/32, n_heads=4, drop_rate=0.0, qkv_bias=False
    # TODO(synk): dropout is omitted (drop_rate=0.0 / eval mode -> identity).
    jax.config.update("jax_default_matmul_precision", "highest")  # fair f32 comparison
    key = jax.random.PRNGKey(0)
    ks = jax.random.split(key, 4)

    B, D, NH = 2, 32, 4
    Hff = 4 * D
    params = _make_params(key, D, Hff)

    # Test 1: single q/kv tile, f32 MXU path.
    T1 = 8
    x1 = jax.random.normal(ks[0], (B, T1, D), jnp.float32)
    out1 = jax.block_until_ready(transformer_block(x1, params, NH, mm_dtype=jnp.float32))
    ref1 = _reference(x1, params, NH)
    assert out1.shape == (B, T1, D)
    assert jnp.allclose(out1, ref1, rtol=1e-3, atol=1e-3), "mismatch (T=8, f32)"

    # Test 2: multiple query tiles + multiple KV tiles (online softmax + causal skipping).
    T2 = 32
    x2 = jax.random.normal(ks[1], (B, T2, D), jnp.float32)
    out2 = jax.block_until_ready(
        transformer_block(x2, params, NH, q_tile=8, kv_tile=8, mm_dtype=jnp.float32))
    ref2 = _reference(x2, params, NH)
    assert out2.shape == (B, T2, D)
    assert jnp.allclose(out2, ref2, rtol=1e-3, atol=1e-3), "mismatch (T=32, tiled, f32)"

    # Test 3: default bf16 MXU path (expected small precision loss vs the f32 reference).
    out3 = jax.block_until_ready(transformer_block(x2, params, NH))
    assert out3.shape == (B, T2, D)
    err = jnp.max(jnp.abs(out3.astype(jnp.float32) - ref2))
    assert bool(err < 0.2), f"bf16 path error too large: {err}"

    print("KERNEL_OK")
</pallas_src>

<mosaic_0001>
module attributes {stable_mosaic.version = 11 : i64} {
  func.func @_qkv_kernel(%arg0: i32, %arg1: i32, %arg2: memref<1x8x32xf32, #tpu.memory_space<vmem>>, %arg3: memref<32x96xf32, #tpu.memory_space<vmem>>, %arg4: memref<1x32xf32, #tpu.memory_space<vmem>>, %arg5: memref<1x32xf32, #tpu.memory_space<vmem>>, %arg6: memref<1x8x32xf32, #tpu.memory_space<vmem>>, %arg7: memref<1x8x32xf32, #tpu.memory_space<vmem>>, %arg8: memref<1x8x32xf32, #tpu.memory_space<vmem>>) attributes {dimension_semantics = [#tpu.dimension_semantics<parallel>, #tpu.dimension_semantics<parallel>], iteration_bounds = array<i64: 2, 1>, scalar_prefetch = 0 : i64, scratch_operands = 0 : i64, tpu.core_type = #tpu.core_type<tc>, window_params = [{transform_indices = @transform_0, window_bounds = array<i64: 1, 8, 32>}, {pipeline_mode = #tpu.pipeline_mode<synchronous>, transform_indices = @transform_1, window_bounds = array<i64: 32, 96>}, {pipeline_mode = #tpu.pipeline_mode<synchronous>, transform_indices = @transform_2, window_bounds = array<i64: 1, 32>}, {pipeline_mode = #tpu.pipeline_mode<synchronous>, transform_indices = @transform_3, window_bounds = array<i64: 1, 32>}, {transform_indices = @transform_4, window_bounds = array<i64: 1, 8, 32>}, {transform_indices = @transform_5, window_bounds = array<i64: 1, 8, 32>}, {transform_indices = @transform_6, window_bounds = array<i64: 1, 8, 32>}]} {
    %c0 = arith.constant 0 : index
    %c0_0 = arith.constant 0 : index
    %c0_1 = arith.constant 0 : index
    %0 = vector.load %arg2[%c0, %c0_0, %c0_1] : memref<1x8x32xf32, #tpu.memory_space<vmem>>, vector<1x8x32xf32>
    %1 = vector.shape_cast %0 : vector<1x8x32xf32> to vector<8x32xf32>
    %c0_2 = arith.constant 0 : index
    %c0_3 = arith.constant 0 : index
    %2 = vector.load %arg4[%c0_2, %c0_3] : memref<1x32xf32, #tpu.memory_space<vmem>>, vector<1x32xf32>
    %c0_4 = arith.constant 0 : index
    %c0_5 = arith.constant 0 : index
    %3 = vector.load %arg5[%c0_4, %c0_5] : memref<1x32xf32, #tpu.memory_space<vmem>>, vector<1x32xf32>
    %cst = arith.constant dense<0.000000e+00> : vector<8xf32>
    %4 = vector.multi_reduction <add>, %1, %cst [1] : vector<8x32xf32> to vector<8xf32>
    %5 = vector.shape_cast %4 : vector<8xf32> to vector<8x1xf32>
    %cst_6 = arith.constant 3.200000e+01 : f32
    %6 = vector.broadcast %cst_6 : f32 to vector<8x1xf32>
    %7 = arith.divf %5, %6 : vector<8x1xf32>
    %8 = vector.broadcast %7 : vector<8x1xf32> to vector<8x32xf32>
    %9 = arith.subf %1, %8 : vector<8x32xf32>
    %10 = arith.mulf %9, %9 : vector<8x32xf32>
    %cst_7 = arith.constant dense<0.000000e+00> : vector<8xf32>
    %11 = vector.multi_reduction <add>, %10, %cst_7 [1] : vector<8x32xf32> to vector<8xf32>
    %12 = vector.shape_cast %11 : vector<8xf32> to vector<8x1xf32>
    %cst_8 = arith.constant 3.200000e+01 : f32
    %13 = vector.broadcast %cst_8 : f32 to vector<8x1xf32>
    %14 = arith.divf %12, %13 : vector<8x1xf32>
    %15 = vector.broadcast %7 : vector<8x1xf32> to vector<8x32xf32>
    %16 = arith.subf %1, %15 : vector<8x32xf32>
    %cst_9 = arith.constant 9.99999974E-6 : f32
    %17 = vector.broadcast %cst_9 : f32 to vector<8x1xf32>
    %18 = arith.addf %14, %17 : vector<8x1xf32>
    %19 = math.sqrt %18 : vector<8x1xf32>
    %20 = vector.broadcast %19 : vector<8x1xf32> to vector<8x32xf32>
    %21 = arith.divf %16, %20 : vector<8x32xf32>
    %22 = vector.broadcast %2 : vector<1x32xf32> to vector<8x32xf32>
    %23 = arith.mulf %22, %21 : vector<8x32xf32>
    %24 = vector.broadcast %3 : vector<1x32xf32> to vector<8x32xf32>
    %25 = arith.addf %23, %24 : vector<8x32xf32>
    %c0_10 = arith.constant 0 : index
    %c0_11 = arith.constant 0 : index
    %26 = vector.load %arg3[%c0_10, %c0_11] : memref<32x96xf32, #tpu.memory_space<vmem>>, vector<32x96xf32>
    %cst_12 = arith.constant dense<0.000000e+00> : vector<8x96xf32>
    %27 = tpu.matmul %25, %26, %cst_12 {dimension_numbers = #tpu.dot_dimension_numbers<[1], [0], [0], [1], [0, 0, 1, 1], [], []>, precision = #tpu.contract_precision<fp32>} : vector<8x32xf32>, vector<32x96xf32>, vector<8x96xf32> -> vector<8x96xf32>
    %28 = vector.extract_strided_slice %27 {offsets = [0, 0], sizes = [8, 32], strides = [1, 1]} : vector<8x96xf32> to vector<8x32xf32>
    %c0_13 = arith.constant 0 : index
    %c0_14 = arith.constant 0 : index
    %c0_15 = arith.constant 0 : index
    %29 = vector.load %arg6[%c0_13, %c0_14, %c0_15] : memref<1x8x32xf32, #tpu.memory_space<vmem>>, vector<1x8x32xf32>
    %30 = vector.shape_cast %29 : vector<1x8x32xf32> to vector<8x32xf32>
    %31 = vector.shape_cast %28 : vector<8x32xf32> to vector<1x8x32xf32>
    tpu.vector_store %arg6[%c0_13, %c0_14, %c0_15], %31 {strides = array<i32>} : memref<1x8x32xf32, #tpu.memory_space<vmem>>, vector<1x8x32xf32>,
    %32 = vector.extract_strided_slice %27 {offsets = [0, 32], sizes = [8, 32], strides = [1, 1]} : vector<8x96xf32> to vector<8x32xf32>
    %c0_16 = arith.constant 0 : index
    %c0_17 = arith.constant 0 : index
    %c0_18 = arith.constant 0 : index
    %33 = vector.load %arg7[%c0_16, %c0_17, %c0_18] : memref<1x8x32xf32, #tpu.memory_space<vmem>>, vector<1x8x32xf32>
    %34 = vector.shape_cast %33 : vector<1x8x32xf32> to vector<8x32xf32>
    %35 = vector.shape_cast %32 : vector<8x32xf32> to vector<1x8x32xf32>
    tpu.vector_store %arg7[%c0_16, %c0_17, %c0_18], %35 {strides = array<i32>} : memref<1x8x32xf32, #tpu.memory_space<vmem>>, vector<1x8x32xf32>,
    %36 = vector.extract_strided_slice %27 {offsets = [0, 64], sizes = [8, 32], strides = [1, 1]} : vector<8x96xf32> to vector<8x32xf32>
    %c0_19 = arith.constant 0 : index
    %c0_20 = arith.constant 0 : index
    %c0_21 = arith.constant 0 : index
    %37 = vector.load %arg8[%c0_19, %c0_20, %c0_21] : memref<1x8x32xf32, #tpu.memory_space<vmem>>, vector<1x8x32xf32>
    %38 = vector.shape_cast %37 : vector<1x8x32xf32> to vector<8x32xf32>
    %39 = vector.shape_cast %36 : vector<8x32xf32> to vector<1x8x32xf32>
    tpu.vector_store %arg8[%c0_19, %c0_20, %c0_21], %39 {strides = array<i32>} : memref<1x8x32xf32, #tpu.memory_space<vmem>>, vector<1x8x32xf32>,
    return
  }
  func.func @transform_0(%arg0: i32, %arg1: i32) -> (i32, i32, i32) {
    %c0_i32 = arith.constant 0 : i32
    %c0_i32_0 = arith.constant 0 : i32
    return %arg0, %arg1, %c0_i32 : i32, i32, i32
  }
  func.func @transform_1(%arg0: i32, %arg1: i32) -> (i32, i32) {
    %c0_i32 = arith.constant 0 : i32
    %c0_i32_0 = arith.constant 0 : i32
    %c0_i32_1 = arith.constant 0 : i32
    return %c0_i32, %c0_i32_0 : i32, i32
  }
  func.func @transform_2(%arg0: i32, %arg1: i32) -> (i32, i32) {
    %c0_i32 = arith.constant 0 : i32
    %c0_i32_0 = arith.constant 0 : i32
    %c0_i32_1 = arith.constant 0 : i32
    return %c0_i32, %c0_i32_0 : i32, i32
  }
  func.func @transform_3(%arg0: i32, %arg1: i32) -> (i32, i32) {
    %c0_i32 = arith.constant 0 : i32
    %c0_i32_0 = arith.constant 0 : i32
    %c0_i32_1 = arith.constant 0 : i32
    return %c0_i32, %c0_i32_0 : i32, i32
  }
  func.func @transform_4(%arg0: i32, %arg1: i32) -> (i32, i32, i32) {
    %c0_i32 = arith.constant 0 : i32
    %c0_i32_0 = arith.constant 0 : i32
    return %arg0, %arg1, %c0_i32 : i32, i32, i32
  }
  func.func @transform_5(%arg0: i32, %arg1: i32) -> (i32, i32, i32) {
    %c0_i32 = arith.constant 0 : i32
    %c0_i32_0 = arith.constant 0 : i32
    return %arg0, %arg1, %c0_i32 : i32, i32, i32
  }
  func.func @transform_6(%arg0: i32, %arg1: i32) -> (i32, i32, i32) {
    %c0_i32 = arith.constant 0 : i32
    %c0_i32_0 = arith.constant 0 : i32
    return %arg0, %arg1, %c0_i32 : i32, i32, i32
  }
}

module attributes {stable_mosaic.version = 11 : i64} {
  func.func @_qkv_kernel(%arg0: i32, %arg1: i32, %arg2: memref<1x8x32xf32, #tpu.memory_space<vmem>>, %arg3: memref<32x96xf32, #tpu.memory_space<vmem>>, %arg4: memref<1x32xf32, #tpu.memory_space<vmem>>, %arg5: memref<1x32xf32, #tpu.memory_space<vmem>>, %arg6: memref<1x8x32xf32, #tpu.memory_space<vmem>>, %arg7: memref<1x8x32xf32, #tpu.memory_space<vmem>>, %arg8: memref<1x8x32xf32, #tpu.memory_space<vmem>>) attributes {dimension_semantics = [#tpu.dimension_semantics<parallel>, #tpu.dimension_semantics<parallel>], iteration_bounds = array<i64: 2, 1>, scalar_prefetch = 0 : i64, scratch_operands = 0 : i64, tpu.core_type = #tpu.core_type<tc>, window_params = [{transform_indices = @transform_0, window_bounds = array<i64: 1, 8, 32>}, {pipeline_mode = #tpu.pipeline_mode<synchronous>, transform_indices = @transform_1, window_bounds = array<i64: 32, 96>}, {pipeline_mode = #tpu.pipeline_mode<synchronous>, transform_indices = @transform_2, window_bounds = array<i64: 1, 32>}, {pipeline_mode = #tpu.pipeline_mode<synchronous>, transform_indices = @transform_3, window_bounds = array<i64: 1, 32>}, {transform_indices = @transform_4, window_bounds = array<i64: 1, 8, 32>}, {transform_indices = @transform_5, window_bounds = array<i64: 1, 8, 32>}, {transform_indices = @transform_6, window_bounds = array<i64: 1, 8, 32>}]} {
    %c0 = arith.constant 0 : index
    %c0_0 = arith.constant 0 : index
    %c0_1 = arith.constant 0 : index
    %0 = vector.load %arg2[%c0, %c0_0, %c0_1] : memref<1x8x32xf32, #tpu.memory_space<vmem>>, vector<1x8x32xf32>
    %1 = vector.shape_cast %0 : vector<1x8x32xf32> to vector<8x32xf32>
    %c0_2 = arith.constant 0 : index
    %c0_3 = arith.constant 0 : index
    %2 = vector.load %arg4[%c0_2, %c0_3] : memref<1x32xf32, #tpu.memory_space<vmem>>, vector<1x32xf32>
    %c0_4 = arith.constant 0 : index
    %c0_5 = arith.constant 0 : index
    %3 = vector.load %arg5[%c0_4, %c0_5] : memref<1x32xf32, #tpu.memory_space<vmem>>, vector<1x32xf32>
    %cst = arith.constant dense<0.000000e+00> : vector<8xf32>
    %4 = vector.multi_reduction <add>, %1, %cst [1] : vector<8x32xf32> to vector<8xf32>
    %5 = vector.shape_cast %4 : vector<8xf32> to vector<8x1xf32>
    %cst_6 = arith.constant 3.200000e+01 : f32
    %6 = vector.broadcast %cst_6 : f32 to vector<8x1xf32>
    %7 = arith.divf %5, %6 : vector<8x1xf32>
    %8 = vector.broadcast %7 : vector<8x1xf32> to vector<8x32xf32>
    %9 = arith.subf %1, %8 : vector<8x32xf32>
    %10 = arith.mulf %9, %9 : vector<8x32xf32>
    %cst_7 = arith.constant dense<0.000000e+00> : vector<8xf32>
    %11 = vector.multi_reduction <add>, %10, %cst_7 [1] : vector<8x32xf32> to vector<8xf32>
    %12 = vector.shape_cast %11 : vector<8xf32> to vector<8x1xf32>
    %cst_8 = arith.constant 3.200000e+01 : f32
    %13 = vector.broadcast %cst_8 : f32 to vector<8x1xf32>
    %14 = arith.divf %12, %13 : vector<8x1xf32>
    %15 = vector.broadcast %7 : vector<8x1xf32> to vector<8x32xf32>
    %16 = arith.subf %1, %15 : vector<8x32xf32>
    %cst_9 = arith.constant 9.99999974E-6 : f32
    %17 = vector.broadcast %cst_9 : f32 to vector<8x1xf32>
    %18 = arith.addf %14, %17 : vector<8x1xf32>
    %19 = math.sqrt %18 : vector<8x1xf32>
    %20 = vector.broadcast %19 : vector<8x1xf32> to vector<8x32xf32>
    %21 = arith.divf %16, %20 : vector<8x32xf32>
    %22 = vector.broadcast %2 : vector<1x32xf32> to vector<8x32xf32>
    %23 = arith.mulf %22, %21 : vector<8x32xf32>
    %24 = vector.broadcast %3 : vector<1x32xf32> to vector<8x32xf32>
    %25 = arith.addf %23, %24 : vector<8x32xf32>
    %c0_10 = arith.constant 0 : index
    %c0_11 = arith.constant 0 : index
    %26 = vector.load %arg3[%c0_10, %c0_11] : memref<32x96xf32, #tpu.memory_space<vmem>>, vector<32x96xf32>
    %cst_12 = arith.constant dense<0.000000e+00> : vector<8x96xf32>
    %27 = tpu.matmul %25, %26, %cst_12 {dimension_numbers = #tpu.dot_dimension_numbers<[1], [0], [0], [1], [0, 0, 1, 1], [], []>, precision = #tpu.contract_precision<fp32>} : vector<8x32xf32>, vector<32x96xf32>, vector<8x96xf32> -> vector<8x96xf32>
    %28 = vector.extract_strided_slice %27 {offsets = [0, 0], sizes = [8, 32], strides = [1, 1]} : vector<8x96xf32> to vector<8x32xf32>
    %c0_13 = arith.constant 0 : index
    %c0_14 = arith.constant 0 : index
    %c0_15 = arith.constant 0 : index
    %29 = vector.load %arg6[%c0_13, %c0_14, %c0_15] : memref<1x8x32xf32, #tpu.memory_space<vmem>>, vector<1x8x32xf32>
    %30 = vector.shape_cast %29 : vector<1x8x32xf32> to vector<8x32xf32>
    %31 = vector.shape_cast %28 : vector<8x32xf32> to vector<1x8x32xf32>
    tpu.vector_store %arg6[%c0_13, %c0_14, %c0_15], %31 {strides = array<i32>} : memref<1x8x32xf32, #tpu.memory_space<vmem>>, vector<1x8x32xf32>,
    %32 = vector.extract_strided_slice %27 {offsets = [0, 32], sizes = [8, 32], strides = [1, 1]} : vector<8x96xf32> to vector<8x32xf32>
    %c0_16 = arith.constant 0 : index
    %c0_17 = arith.constant 0 : index
    %c0_18 = arith.constant 0 : index
    %33 = vector.load %arg7[%c0_16, %c0_17, %c0_18] : memref<1x8x32xf32, #tpu.memory_space<vmem>>, vector<1x8x32xf32>
    %34 = vector.shape_cast %33 : vector<1x8x32xf32> to vector<8x32xf32>
    %35 = vector.shape_cast %32 : vector<8x32xf32> to vector<1x8x32xf32>
    tpu.vector_store %arg7[%c0_16, %c0_17, %c0_18], %35 {strides = array<i32>} : memref<1x8x32xf32, #tpu.memory_space<vmem>>, vector<1x8x32xf32>,
    %36 = vector.extract_strided_slice %27 {offsets = [0, 64], sizes = [8, 32], strides = [1, 1]} : vector<8x96xf32> to vector<8x32xf32>
    %c0_19 = arith.constant 0 : index
    %c0_20 = arith.constant 0 : index
    %c0_21 = arith.constant 0 : index
    %37 = vector.load %arg8[%c0_19, %c0_20, %c0_21] : memref<1x8x32xf32, #tpu.memory_space<vmem>>, vector<1x8x32xf32>
    %38 = vector.shape_cast %37 : vector<1x8x32xf32> to vector<8x32xf32>
    %39 = vector.shape_cast %36 : vector<8x32xf32> to vector<1x8x32xf32>
    tpu.vector_store %arg8[%c0_19, %c0_20, %c0_21], %39 {strides = array<i32>} : memref<1x8x32xf32, #tpu.memory_space<vmem>>, vector<1x8x32xf32>,
    return
  }
  func.func @transform_0(%arg0: i32, %arg1: i32) -> (i32, i32, i32) {
    %c0_i32 = arith.constant 0 : i32
    %c0_i32_0 = arith.constant 0 : i32
    return %arg0, %arg1, %c0_i32 : i32, i32, i32
  }
  func.func @transform_1(%arg0: i32, %arg1: i32) -> (i32, i32) {
    %c0_i32 = arith.constant 0 : i32
    %c0_i32_0 = arith.constant 0 : i32
    %c0_i32_1 = arith.constant 0 : i32
    return %c0_i32, %c0_i32_0 : i32, i32
  }
  func.func @transform_2(%arg0: i32, %arg1: i32) -> (i32, i32) {
    %c0_i32 = arith.constant 0 : i32
    %c0_i32_0 = arith.constant 0 : i32
    %c0_i32_1 = arith.constant 0 : i32
    return %c0_i32, %c0_i32_0 : i32, i32
  }
  func.func @transform_3(%arg0: i32, %arg1: i32) -> (i32, i32) {
    %c0_i32 = arith.constant 0 : i32
    %c0_i32_0 = arith.constant 0 : i32
    %c0_i32_1 = arith.constant 0 : i32
    return %c0_i32, %c0_i32_0 : i32, i32
  }
  func.func @transform_4(%arg0: i32, %arg1: i32) -> (i32, i32, i32) {
    %c0_i32 = arith.constant 0 : i32
    %c0_i32_0 = arith.constant 0 : i32
    return %arg0, %arg1, %c0_i32 : i32, i32, i32
  }
  func.func @transform_5(%arg0: i32, %arg1: i32) -> (i32, i32, i32) {
    %c0_i32 = arith.constant 0 : i32
    %c0_i32_0 = arith.constant 0 : i32
    return %arg0, %arg1, %c0_i32 : i32, i32, i32
  }
  func.func @transform_6(%arg0: i32, %arg1: i32) -> (i32, i32, i32) {
    %c0_i32 = arith.constant 0 : i32
    %c0_i32_0 = arith.constant 0 : i32
    return %arg0, %arg1, %c0_i32 : i32, i32, i32
  }
}

</mosaic_0001>

<bundles_post_ra>
// kernel: tpu_custom_call.1
= control target key start
LH: loop header
LB: loop body
LE: loop exit
PB: predicated region body
PF: predicated region fallthrough
CT: control target
= control target key end

     0   :  { %s1943_s0 = inlined_call_operand.hbm [shape: f32[2,8,32], index: 0, kind: input, shape index: {}]   ;;  %s1944_s1 = inlined_call_operand.hbm [shape: f32[32,96], index: 1, kind: input, shape index: {}]   ;;  %s1945_s2 = inlined_call_operand.vmem [shape: f32[1,32], index: 2, kind: input, shape index: {}]   ;;  %s1946_s3 = inlined_call_operand.vmem [shape: f32[1,32], index: 3, kind: input, shape index: {}]   ;;  %s1947_s4 = inlined_call_operand.hbm [shape: f32[2,8,32], index: 4, kind: output, shape index: {0}]   ;;  %s1948_s5 = inlined_call_operand.hbm [shape: f32[2,8,32], index: 5, kind: output, shape index: {1}]   ;;  %s1949_s6 = inlined_call_operand.hbm [shape: f32[2,8,32], index: 6, kind: output, shape index: {2}]  }
   0x1   :  { %1954 = sst [smem:[#allocation15_spill]] %s1944_s1 }
   0x2   :  { %12 = vsyncpa [#allocation3], 0 }
   0x3   :  { %14 = vsyncpa [#allocation3 + $0x1], 0 }
   0x4   :  { %15 = vsyncpa [#allocation6], 0 }
   0x5   :  { %16 = vsyncpa [#allocation4], 0 }
   0x6   :  { %18 = vsyncpa [#allocation4 + $0x1], 0 }
   0x7   :  { %19 = vsyncpa [#allocation9], 0 }
   0x8   :  { %21 = vsyncpa [#allocation9 + $0x1], 0  ;;  %s1579_s21 = smov 0   ;;  %s1581_s22 = smov 0  }
   0x9   :  { %s1583_s23 = smov 0   ;;  %s1585_s24 = smov 0  }
   0xa   :  { %s1587_s25 = smov 0   ;;  %s1589_s26 = smov 0  }
   0xb LB: > { %s1610_s27 = sadd.s32 4294967295, %s1530_s26   ;;  %s1953_s28 = sadd.s32 4294967294, %s1530_s26   ;;  %s1530_s26 = sphi %s1589_s26, %s27_s26   ;;  %s1526_s25 = sphi %s1587_s25, %s1975_s25   ;;  %s1522_s24 = sphi %s1585_s24, %s1974_s24   ;;  %s1518_s23 = sphi %s1583_s23, %s1973_s23   ;;  %s1514_s22 = sphi %s1581_s22, %s1972_s22   ;;  %s1510_s21 = sphi %s1579_s21, %s1971_s21  }
   0xc   : > { %p61_p0 = scmp.ne.s32.totalorder %s1514_s22, %s1510_s21  ;;  %p1950_p1 = scmp.eq.s32.totalorder %s1610_s27, 0 }
   0xd   : > { %p156_p3 = scmp.eq.s32.totalorder %s1953_s28, 1  ;;  %p1070_p5 = scmp.ge.s32.totalorder %s1530_s26, 1 }
   0xe   : > { %p1621_p4 = por %p1950_p1, %p61_p0  ;;  %p219_p7 = scmp.lt.s32.totalorder %s1530_s26, 3 }
   0xf   : > { %p1626_p6 = por %p156_p3, %p61_p0  ;;  %s1532_s8 = smov [#allocation5]  }
  0x10   : > { %s1955_s29 = scalar_select %p1621_p4, 1, 0 }
  0x11   : > { %s1956_s30 = scalar_select %p1626_p6, 1, 0 }
  0x12   : > { %p1631_p8 = pnand %p1070_p5, %p219_p7  ;;  %s231_s9 = sshll.u32 %s1532_s8, 4  ;;  %s232_s9 = int_to_ptr.vmem [resolvable:$true] %s231_s9 }
  0x13   : > { %s39_s11 = sadd.s32 1, %s1526_s25  ;;  %s1959_s1 = sld [smem:[#allocation15_spill]] }
  0x14   : > { %s1957_s7 = scalar_select %p1631_p8, 1, 0 }
  0x15   : > { %p1244_p9 = pneg %p1631_p8 }
  0x17   : > { %p1640_p11 = pnand %p1244_p9, %p1950_p1 }
  0x19   : > { %s1326_s14 = scalar_lea.hbm %s1959_s1, 512  ;;  %p1328_p13 = pneg %p1640_p11 }
  0x1a   : > { %p1327_p12 = scmp.ne.s32.totalorder %s1959_s1, %s1326_s14  ;;  %p1333_p5 = scmp.lt.u32.totalorder %s1326_s14, %s1959_s1 }
  0x1c   : > { %p1329_p0 = pnand %p1328_p13, %p1327_p12 }
  0x1e   : > { %p1330_p3 = pneg %p1329_p0 }
  0x20   : > { %p1335_p7 = pnand %p1333_p5, %p1330_p3 }
  0x22   : > { %1338 = shalt.err (!%p1335_p7)
}
  0x23   : > { %s1339_s19 = scalar_lea.vmem %s232_s9, 512  ;;  %p1347_p2 = scmp.lt.s32.totalorder %s232_s9, %s232_s9 }
  0x24   : > { %p1340_p9 = scmp.ne.s32.totalorder %s232_s9, %s1339_s19  ;;  %p1348_p6 = scmp.lt.s32.totalorder %s1339_s19, %s1339_s19 }
  0x26   : > { %p1342_p10 = pnand %p1340_p9, %p1328_p13  ;;  %p1349_p4 = por %p1348_p6, %p1347_p2 }
  0x28   : > { %p1343_p1 = pneg %p1342_p10 }
  0x2a   : > { %p1350_p8 = pnand %p1349_p4, %p1343_p1 }
  0x2c   : > { %1353 = shalt.err (!%p1350_p8)
}
  0x2d   : > { %s1533_s20 = smov 128   ;;  %s1534_s8 = smov 8  }
  0x2e   : > { %1247 = dma.hbm_to_vmem [thread:$0]  (!%p1640_p11), %s1959_s1, 512, %s232_s9, [#allocation6], %s1533_s20, %s1533_s20, %s1534_s8  }
  0x2f   : > { %p41_p1 = scmp.ge.s32.totalorder %s39_s11, 2  ;;  %s48_s14 = sadd.s32 1, %s1518_s23 }
  0x30   : > { %p55_p2 = scmp.ne.s32.totalorder %s1518_s23, %s1514_s22  ;;  %p56_p4 = scmp.eq.s32.totalorder %s1530_s26, 0 }
  0x31   : > { %s1977_s11 = smov (%p41_p1, %s39_s11), 0  ;;  %p1961_p8 = scmp.eq.s32.totalorder %s1610_s27, 1 }
  0x32   : > { %p1667_p6 = por %p56_p4, %p55_p2  ;;  %s43_s10 = ssub.s32 %s1526_s25, %s1977_s11 }
  0x33   : > { %p1673_p10 = por %p1961_p8, %p55_p2  ;;  %p1263_p12 = scmp.lt.s32.totalorder %s1530_s26, 2 }
  0x34   : > { %p46_p11 = scmp.eq.s32.totalorder %s43_s10, 0  ;;  %s251_s9 = sand.u32 1, %s1518_s23  }
  0x35   : > { %s1073_s17 = sshll.u32 %s251_s9, 3  ;;  %s1074_s19 = sshll.u32 %s1526_s25, 7 }
  0x36   : > { %s1682_s18 = scalar_select %p46_p11, %s1518_s23, %s48_s14  }
  0x37   : > { %s1688_s12 = scalar_lea.hbm %s1943_s0, %s1074_s19  ;;  %s255_s13 = scalar_lea.vmem [#allocation2], %s1073_s17 }
  0x38   : > { %s263_s28 = sshll.u32 %s255_s13, 4  ;;  %p1694_p13 = pnand %p1263_p12, %p1667_p6  ;;  %s1690_s28 = int_to_ptr.vmem [resolvable:$true] %s263_s28 }
  0x39   : > { %s252_s14 = scalar_lea.sflag [#allocation3], %s251_s9  ;;  %s1354_s1 = scalar_lea.hbm %s1688_s12, 128 }
  0x3a   : > { %p1355_p0 = scmp.ne.s32.totalorder %s1688_s12, %s1354_s1  ;;  %p1356_p3 = pneg %p1694_p13 }
  0x3b   : > { %s1359_s20 = scalar_lea.hbm %s1943_s0, 256  ;;  %p1360_p9 = scmp.lt.u32.totalorder %s1688_s12, %s1943_s0 }
  0x3c   : > { %p1357_p5 = pnand %p1356_p3, %p1355_p0  ;;  %p1361_p1 = scmp.lt.u32.totalorder %s1359_s20, %s1354_s1 }
  0x3d   : > { %p1363_p4 = scmp.lt.u32.totalorder %s1354_s1, %s1688_s12 }
  0x3e   : > { %p1358_p7 = pneg %p1357_p5  ;;  %p1362_p2 = por %p1361_p1, %p1360_p9 }
  0x40   : > { %p1364_p6 = por %p1363_p4, %p1362_p2 }
  0x42   : > { %p1365_p8 = pnand %p1364_p6, %p1358_p7 }
  0x44   : > { %1368 = shalt.err (!%p1365_p8)
}
  0x45   : > { %s1369_s9 = scalar_lea.vmem %s1690_s28, 128  ;;  %s1535_s13 = smov [#allocation2]  }
  0x46   : > { %p1370_p12 = scmp.ne.s32.totalorder %s1690_s28, %s1369_s9  ;;  %s1374_s17 = sshll.u32 %s1535_s13, 4  ;;  %s1375_s17 = int_to_ptr.vmem [resolvable:$false] %s1374_s17 }
  0x47   : > { %s1376_s19 = scalar_lea.vmem %s1375_s17, 256  ;;  %p1377_p5 = scmp.lt.s32.totalorder %s1690_s28, %s1375_s17 }
  0x48   : > { %p1372_p11 = pnand %p1370_p12, %p1356_p3  ;;  %p1378_p9 = scmp.lt.s32.totalorder %s1376_s19, %s1369_s9 }
  0x4a   : > { %p1373_p0 = pneg %p1372_p11  ;;  %p1379_p1 = por %p1378_p9, %p1377_p5 }
  0x4c   : > { %p1380_p2 = pnand %p1379_p1, %p1373_p0 }
  0x4e   : > { %1383 = shalt.err (!%p1380_p2)
}
  0x4f   : > { %1251 = dma.hbm_to_vmem [thread:$0]  (!%p1694_p13), %s1688_s12, 128, %s1690_s28, %s252_s14  }
  0x50   : > { %p1964_p7 = scmp.ne.s32.totalorder %s1957_s7, 0 }
  0x51   : > { %s1726_s1 = sand.u32 (!%p1964_p7), 1, %s1514_s22   ;;  %p1965_p3 = scmp.ne.s32.totalorder (!%p1964_p7), %s1955_s29, 0 }
  0x52   : > { %272 = sbr.rel (%p1964_p7) target bundleno = 815 (0x32f), region = 36  ;;  %s1729_s20 = sshll.u32 (!%p1964_p7), %s1726_s1, 3 }
  0x53   : > { %s275_s15 = scalar_lea.sflag (!%p1964_p7), [#allocation3], %s1726_s1  ;;  %s278_s8 = scalar_lea.vmem (!%p1964_p7), [#allocation2], %s1729_s20 }
  0x59   : > { %1493 = dma.done.wait (%p1965_p3), %s275_s15, 128  }
  0x5a   : > { %1495 = vsyncadd (%p1965_p3), %s275_s15, 4294967168  ;;  %p1966_p13 = scmp.eq.s32.totalorder %s1610_s27, 0 }
  0x5c   : > { %1497 = dma.done.wait (%p1966_p13), [#allocation6], 512   ;;  %p1967_p4 = pmov %p1966_p13 }
  0x5d   : > { %vm324_vm0 = vcmask 261120   ;;  %v321_v0 = vld [vmem:[%s278_s8] sm:$0xff]  ;;  %v360_v7 = vld [vmem:[#allocation5] sm:$0xff]  ;;  %v361_v8 = vld [vmem:[#allocation5 + $0x8] sm:$0xff]  ;;  %v1536_v10 = vmov 0.0|0.0   ;;  %vm1537_vm1 = vmmov 0  }
  0x5e   : > { %1499 = vsyncadd (%p1967_p4), [#allocation6], 4294966784  ;;  %v325_v1 = vsel %vm324_vm0, %v321_v0, 0.0  ;;  %v362_v9 = vld [vmem:[#allocation5 + $0x10] sm:$0xff]  ;;  %1205 = vmatprep.subr.bf16.mxu0 %v1536_v10  ;;  %v368_v11 = vand.u32 4294901760, %v360_v7  ;;  %v371_v12 = vand.u32 4294901760, %v361_v8  ;;  %1187 = vmatprep.subr.bf16.mxu1 %v1536_v10 }
  0x5f   : > { %326 = vadd.xlane.f32.xlu0 %v325_v1  ;;  %v363_v13 = vld [vmem:[#allocation5 + $0x18] sm:$0xff]  ;;  %v374_v14 = vand.u32 4294901760, %v362_v9  ;;  %v1538_v16 = vmov 0.0   ;;  %v1081_v50 = vld [vmem:[%s1945_s2] ss:$0 sm:$0xff]  ;;  %s1810_s10 = sshll.u32 %s1522_s24, 7 }
  0x60   : > { %v377_v15 = vand.u32 4294901760, %v363_v13  ;;  %1162 = vmatprep.mubr.msk.f32.mxu0 %vm1537_vm1, %v1538_v16  ;;  %1129 = vmatprep.mubr.msk.f32.mxu1 %vm1537_vm1, %v1538_v16  ;;  %v1753_v17 = vpack.c.bf16 %v371_v12, %v368_v11  ;;  %v1755_v18 = vsub.f32 %v360_v7, %v368_v11  ;;  %v1757_v19 = vsub.f32 %v361_v8, %v371_v12  ;;  %v1082_v52 = vld [vmem:[%s1946_s3] ss:$0 sm:$0xff]  ;;  %s306_s14 = scalar_lea.vmem [#allocation7], %s1729_s20  ;;  %s1817_s19 = scalar_lea.hbm %s1947_s4, %s1810_s10 }
  0x61   : > { %v1759_v20 = vsub.f32 %v362_v9, %v374_v14  ;;  %s887_s9 = sshll.u32 %s306_s14, 4  ;;  %s1539_s15 = smov 96   ;;  %s1819_s9 = int_to_ptr.vmem [resolvable:$true] %s887_s9 }
  0x62   : > { %v1761_v21 = vsub.f32 %v363_v13, %v377_v15  ;;  %1207 = vmatpush3.bf16.msra.mxu0 %v1753_v17  ;;  %1189 = vmatpush3.bf16.msra.mxu1 %v1753_v17  ;;  %v1765_v22 = vpack.c.bf16 %v377_v15, %v374_v14  ;;  %v449_v23 = vand.u32 4294901760, %v1755_v18  ;;  %v456_v24 = vand.u32 4294901760, %v1757_v19  ;;  %s863_s24 = scalar_lea.sflag [#allocation4], %s1726_s1  ;;  %s1384_s8 = scalar_lea.vmem %s1819_s9, 128 }
  0x63   : > { %1208 = vmatprep.subr.bf16.mxu0 %v1536_v10  ;;  %1190 = vmatprep.subr.bf16.mxu1 %v1536_v10  ;;  %v463_v30 = vand.u32 4294901760, %v1759_v20  ;;  %v1200_v39 = vpack.c.bf16 %v1757_v19, %v1755_v18  ;;  %p1385_p6 = scmp.ne.s32.totalorder %s1819_s9, %s1384_s8  ;;  %s1540_s28 = smov [#allocation7]  }
  0x64   : > { %v1212_v25 = vpack.c.bf16 %v456_v24, %v449_v23  ;;  %v450_v26 = vsub.f32 %v1755_v18, %v449_v23  ;;  %v457_v27 = vsub.f32 %v1757_v19, %v456_v24  ;;  %v470_v31 = vand.u32 4294901760, %v1761_v21  ;;  %s1388_s29 = sshll.u32 %s1540_s28, 4  ;;  %s1389_s29 = int_to_ptr.vmem [resolvable:$false] %s1388_s29 }
  0x65   : > { %v464_v34 = vsub.f32 %v1759_v20, %v463_v30  ;;  %v1203_v40 = vpack.c.bf16 %v1761_v21, %v1759_v20  ;;  %p1386_p8 = pnand %p1385_p6, %p1673_p10  ;;  %s1390_s7 = scalar_lea.vmem %s1389_s29, 256 }
  0x66   : > { %1210 = vmatpush3.bf16.msra.mxu0 %v1765_v22  ;;  %1192 = vmatpush3.bf16.msra.mxu1 %v1765_v22  ;;  %v451_v28 = vand.u32 4294901760, %v450_v26  ;;  %v458_v29 = vand.u32 4294901760, %v457_v27  ;;  %v1215_v33 = vpack.c.bf16 %v470_v31, %v463_v30  ;;  %v471_v35 = vsub.f32 %v1761_v21, %v470_v31  ;;  %p1391_p11 = scmp.lt.s32.totalorder %s1819_s9, %s1389_s29  ;;  %p1392_p0 = scmp.lt.s32.totalorder %s1390_s7, %s1384_s8 }
  0x67   : > { %1211 = vmatprep.subr.bf16.mxu0 %v1536_v10  ;;  %1193 = vmatprep.subr.bf16.mxu1 %v1536_v10  ;;  %v465_v36 = vand.u32 4294901760, %v464_v34  ;;  %p1387_p12 = pneg %p1386_p8 }
  0x68   : > { %v1194_v32 = vpack.c.bf16 %v458_v29, %v451_v28  ;;  %v472_v37 = vand.u32 4294901760, %v471_v35  ;;  %p1393_p5 = por %p1392_p0, %p1391_p11 }
  0x6a   : > { %v1197_v38 = vpack.c.bf16 %v472_v37, %v465_v36  ;;  %p1394_p9 = pnand %p1393_p5, %p1387_p12 }
  0xec   : > { %v327_v2 = vpop.xlane.xlu0 %326 }
  0xed   : > { %v329_v3 = vmul.f32 0.03125, %v327_v2 }
  0xef   : > { %v1742_v4 = vsub.f32 %v321_v0, %v329_v3 }
  0xf1   : > { %v331_v5 = vmul.f32 %v1742_v4, %v1742_v4 }
  0xf3   : > { %v332_v6 = vsel %vm324_vm0, %v331_v5, 0.0 }
  0xf4   : > { %333 = vadd.xlane.f32.xlu0 %v332_v6 }
 0x181   : > { %v334_v41 = vpop.xlane.xlu0 %333 }
 0x182   : > { %v335_v42 = vmul.f32 0.03125, %v334_v41 }
 0x184   : > { %v336_v43 = vadd.f32 1e-05, %v335_v42 }
 0x186   : > { %1322 = vrsqrt.f32 %v336_v43  ;;  %vm339_vm2 = vcmp.eq.f32.partialorder %v336_v43, inf  ;;  %v342_v46 = vand.u32 2147483648, %v336_v43  ;;  %vm341_vm3 = vcmp.eq.f32.partialorder %v336_v43, 0.0 }
 0x190   : > { %v1323_v44 = vpop.eup %1322 }
 0x191   : > { %v338_v45 = vmul.f32 %v1323_v44, %v336_v43 }
 0x193   : > { %v340_v47 = vsel %vm339_vm2, %v336_v43, %v338_v45 }
 0x194   : > { %v343_v48 = vsel %vm341_vm3, %v342_v46, %v340_v47 }
 0x195   : > { %1324 = vrcp.f32 %v343_v48 }
 0x19f   : > { %v1325_v49 = vpop.eup %1324 }
 0x1a0   : > { %v345_v51 = vmul.f32 %v1325_v49, %v1742_v4 }
 0x1a2   : > { %v352_v53 = vmul.f32 %v1081_v50, %v345_v51 }
 0x1a4   : > { %v359_v54 = vadd.f32 %v1082_v52, %v352_v53 }
 0x1a6   : > { %v365_v55 = vsel %vm324_vm0, %v359_v54, 0 }
 0x1a7   : > { %v436_v56 = vand.u32 4294901760, %v365_v55 }
 0x1a9   : > { %v437_v57 = vsub.f32 %v365_v55, %v436_v56 }
 0x1ab   : > { %v438_v58 = vand.u32 4294901760, %v437_v57 }
 0x1ad   : > { %1163 = vmatmul.mubr.f32.vlgmr.msra.gmra.mrb[0].mxu0 %v438_v58  ;;  %v439_v59 = vsub.f32 %v437_v57, %v438_v58 }
 0x1ae   : > { %1213 = vmatpush3.bf16.msra.mxu0 %v1212_v25  ;;  %1173 = vmatprep.mubr.msk.f32.mxu0 %vm1537_vm1, %v1538_v16 }
 0x1af   : > { %v440_v60 = vand.u32 4294901760, %v439_v59  ;;  %1214 = vmatprep.subr.bf16.mxu0 %v1536_v10 }
 0x1b1   : > { %1130 = vmatmul.mubr.f32.vlgmr.msra.gmra.mrb[0].mxu1 %v440_v60 }
 0x1b2   : > { %1195 = vmatpush3.bf16.msra.mxu1 %v1194_v32  ;;  %1216 = vmatpush3.bf16.msra.mxu0 %v1215_v33 }
 0x1b3   : > { %1196 = vmatprep.subr.bf16.mxu1 %v1536_v10  ;;  %1217 = vmatprep.subr.bf16.mxu0 %v1536_v10 }
 0x1b4   : > { %1140 = vmatprep.mubr.msk.f32.mxu1 %vm1537_vm1, %v1538_v16 }
 0x1b5   : > { %1174 = vmatmul.mubr.f32.vlgmr.msra.gmra.mrb[0].mxu0 %v436_v56 }
 0x1b6   : > { %1198 = vmatpush3.bf16.msra.mxu1 %v1197_v38  ;;  %1219 = vmatpush3.bf16.msra.mxu0 %v1753_v17 }
 0x1b7   : > { %1199 = vmatprep.subr.bf16.mxu1 %v1536_v10  ;;  %1220 = vmatprep.subr.bf16.mxu0 %v1536_v10 }
 0x1b8   : > { %1184 = vmatprep.mubr.msk.f32.mxu0 %vm1537_vm1, %v1538_v16 }
 0x1b9   : > { %1141 = vmatmul.mubr.f32.vlgmr.msra.gmra.mrb[0].mxu1 %v436_v56 }
 0x1ba   : > { %1201 = vmatpush3.bf16.msra.mxu1 %v1200_v39  ;;  %1222 = vmatpush3.bf16.msra.mxu0 %v1765_v22 }
 0x1bb   : > { %1202 = vmatprep.subr.bf16.mxu1 %v1536_v10  ;;  %1151 = vmatprep.mubr.msk.f32.mxu1 %vm1537_vm1, %v1538_v16 }
 0x1bd   : > { %1185 = vmatmul.mubr.f32.vlgmr.msra.gmra.mrb[0].mxu0 %v436_v56 }
 0x1be   : > { %1204 = vmatpush3.bf16.msra.mxu1 %v1203_v40 }
 0x1c1   : > { %1152 = vmatmul.mubr.f32.vlgmr.msra.gmra.mrb[0].mxu1 %v437_v57 }
 0x290   : > { %v848_v61 = vpop.f32.mrb[0].mxu0 }
 0x291   : > { %v1186_v62 = vpop.f32.mrb[1].mxu0 }
 0x294   : > { %v613_v63 = vpop.f32.mrb[0].mxu1 }
 0x295   : > { %v1223_v0 = vadd.f32 %v848_v61, %v613_v63  ;;  %v1153_v1 = vpop.f32.mrb[1].mxu1 }
 0x297   : > { %854 = vrot.lane.b32.xlu1 %v1223_v0, %s1539_s15  ;;  %852 = vst.msk [vmem:[%s306_s14] sm:$0xff] %vm324_vm0, %v1223_v0 }
 0x298   : > { %1397 = shalt.err (!%p1394_p9)
}
 0x299   : > { %s1398_s1 = scalar_lea.hbm %s1817_s19, 128  ;;  %s1402_s13 = scalar_lea.hbm %s1947_s4, 256 }
 0x29a   : > { %p1399_p1 = scmp.ne.s32.totalorder %s1817_s19, %s1398_s1  ;;  %p1403_p3 = scmp.lt.u32.totalorder %s1817_s19, %s1947_s4 }
 0x29b   : > { %p1404_p13 = scmp.lt.u32.totalorder %s1402_s13, %s1398_s1  ;;  %p1406_p6 = scmp.lt.u32.totalorder %s1398_s1, %s1817_s19 }
 0x29c   : > { %p1400_p2 = pnand %p1399_p1, %p1673_p10 }
 0x29d   : > { %p1405_p4 = por %p1404_p13, %p1403_p3 }
 0x29e   : > { %p1401_p7 = pneg %p1400_p2 }
 0x29f   : > { %p1407_p8 = por %p1406_p6, %p1405_p4 }
 0x2a1   : > { %p1408_p12 = pnand %p1407_p8, %p1401_p7 }
 0x2a3   : > { %1411 = shalt.err (!%p1408_p12)
}
 0x2a4   : > { %1238 = dma.vmem_to_hbm [thread:$0]  (%p1673_p10), %s1819_s9, 128, %s1817_s19, %s863_s24  }
 0x2a5   : > { %s1541_s8 = smov 64   ;;  %s867_s28 = sand.u32 1, %s1610_s27  }
 0x2a6   : > { %858 = vrot.lane.b32.xlu1 %v1223_v0, %s1541_s8  ;;  %s313_s29 = scalar_lea.vmem [#allocation8], %s1729_s20  ;;  %s1850_s14 = scalar_lea.hbm %s1948_s5, %s1810_s10 }
 0x2a7   : > { %s901_s7 = sshll.u32 %s313_s29, 4  ;;  %s320_s13 = scalar_lea.vmem [#allocation10], %s1729_s20  ;;  %s1852_s7 = int_to_ptr.vmem [resolvable:$true] %s901_s7 }
 0x2a8   : > { %s1857_s17 = sshll.u32 %s320_s13, 4  ;;  %s1860_s27 = scalar_lea.sflag [#allocation9], %s867_s28  ;;  %s1891_s17 = int_to_ptr.vmem [resolvable:$true] %s1857_s17 }
 0x2a9   : > { %s1412_s9 = scalar_lea.vmem %s1852_s7, 128  ;;  %s1542_s19 = smov [#allocation8]  }
 0x2aa   : > { %p1413_p11 = scmp.ne.s32.totalorder %s1852_s7, %s1412_s9  ;;  %s1416_s24 = sshll.u32 %s1542_s19, 4  ;;  %s1417_s24 = int_to_ptr.vmem [resolvable:$false] %s1416_s24 }
 0x2ab   : > { %s1418_s15 = scalar_lea.vmem %s1417_s24, 256  ;;  %p1419_p9 = scmp.lt.s32.totalorder %s1852_s7, %s1417_s24 }
 0x2ac   : > { %p1414_p0 = pnand %p1413_p11, %p1673_p10  ;;  %p1420_p1 = scmp.lt.s32.totalorder %s1418_s15, %s1412_s9 }
 0x2ae   : > { %p1415_p5 = pneg %p1414_p0  ;;  %p1421_p2 = por %p1420_p1, %p1419_p9 }
 0x2b0   : > { %p1422_p7 = pnand %p1421_p2, %p1415_p5 }
 0x309   : > { %v855_v2 = vpop.permute.xlu1 %854 }
 0x30a   : > { %857 = vst.msk [vmem:[%s313_s29] sm:$0xff] %vm324_vm0, %v855_v2 }
 0x30b   : > { %1425 = shalt.err (!%p1422_p7)
}
 0x30c   : > { %s1426_s8 = scalar_lea.hbm %s1850_s14, 128  ;;  %s1430_s1 = scalar_lea.hbm %s1948_s5, 256 }
 0x30d   : > { %p1427_p3 = scmp.ne.s32.totalorder %s1850_s14, %s1426_s8  ;;  %p1431_p6 = scmp.lt.u32.totalorder %s1850_s14, %s1948_s5 }
 0x30e   : > { %p1432_p8 = scmp.lt.u32.totalorder %s1430_s1, %s1426_s8  ;;  %p1434_p11 = scmp.lt.u32.totalorder %s1426_s8, %s1850_s14 }
 0x30f   : > { %p1428_p13 = pnand %p1427_p3, %p1673_p10 }
 0x310   : > { %p1433_p12 = por %p1432_p8, %p1431_p6 }
 0x311   : > { %p1429_p4 = pneg %p1428_p13 }
 0x312   : > { %p1435_p0 = por %p1434_p11, %p1433_p12 }
 0x314   : > { %p1436_p5 = pnand %p1435_p0, %p1429_p4 }
 0x316   : > { %1439 = shalt.err (!%p1436_p5)
}
 0x317   : > { %1239 = dma.vmem_to_hbm [thread:$0]  (%p1673_p10), %s1852_s7, 128, %s1850_s14, %s1860_s27  }
 0x318   : > { %s1888_s15 = scalar_lea.hbm %s1949_s6, %s1810_s10  ;;  %v859_v3 = vpop.permute.xlu1 %858  ;;  %s1440_s8 = scalar_lea.vmem %s1891_s17, 128 }
 0x319   : > { %861 = vst.msk [vmem:[%s320_s13] sm:$0xff] %vm324_vm0, %v859_v3  ;;  %p1441_p9 = scmp.ne.s32.totalorder %s1891_s17, %s1440_s8  ;;  %s1543_s7 = smov [#allocation10]  }
 0x31a   : > { %s1444_s14 = sshll.u32 %s1543_s7, 4  ;;  %s1445_s14 = int_to_ptr.vmem [resolvable:$false] %s1444_s14 }
 0x31b   : > { %p1442_p1 = pnand %p1441_p9, %p1673_p10  ;;  %s1446_s28 = scalar_lea.vmem %s1445_s14, 256 }
 0x31c   : > { %p1447_p7 = scmp.lt.s32.totalorder %s1891_s17, %s1445_s14  ;;  %p1448_p3 = scmp.lt.s32.totalorder %s1446_s28, %s1440_s8 }
 0x31d   : > { %p1443_p2 = pneg %p1442_p1 }
 0x31e   : > { %p1449_p13 = por %p1448_p3, %p1447_p7 }
 0x320   : > { %p1450_p4 = pnand %p1449_p13, %p1443_p2 }
 0x322   : > { %1453 = shalt.err (!%p1450_p4)
}
 0x323   : > { %s1454_s20 = scalar_lea.hbm %s1888_s15, 128  ;;  %s1458_s29 = scalar_lea.hbm %s1949_s6, 256 }
 0x324   : > { %p1455_p6 = scmp.ne.s32.totalorder %s1888_s15, %s1454_s20  ;;  %p1459_p11 = scmp.lt.u32.totalorder %s1888_s15, %s1949_s6 }
 0x325   : > { %p1460_p0 = scmp.lt.u32.totalorder %s1458_s29, %s1454_s20  ;;  %p1462_p9 = scmp.lt.u32.totalorder %s1454_s20, %s1888_s15 }
 0x326   : > { %p1456_p8 = pnand %p1455_p6, %p1673_p10 }
 0x327   : > { %p1461_p5 = por %p1460_p0, %p1459_p11 }
 0x328   : > { %p1457_p12 = pneg %p1456_p8 }
 0x329   : > { %p1463_p1 = por %p1462_p9, %p1461_p5 }
 0x32b   : > { %p1464_p2 = pnand %p1463_p1, %p1457_p12 }
 0x32d   : > { %1467 = shalt.err (!%p1464_p2)
}
 0x32e   : > { %1240 = dma.vmem_to_hbm [thread:$0]  (%p1673_p10), %s1891_s17, 128, %s1888_s15, %s1860_s27  }
 0x32f PF: > { %s927_s19 = sand.u32 1, %s1510_s21   ;;  %p1968_p7 = scmp.ne.s32.totalorder %s1956_s30, 0 }
 0x330   : > { %p1969_p3 = scmp.ge.s32.totalorder %s1530_s26, 2  ;;  %s928_s9 = scalar_lea.sflag [#allocation4], %s927_s19 }
 0x332   : > { %p1253_p13 = pnand %p1969_p3, %p1968_p7 }
 0x334   : > { %1501 = dma.done.wait (!%p1253_p13), %s928_s9, 128  }
 0x335   : > { %1503 = vsyncadd (!%p1253_p13), %s928_s9, 4294967168  ;;  %s1970_s24 = sadd.s32 4294967294, %s1530_s26  }
 0x336   : > { %s936_s8 = sand.u32 1, %s1970_s24  }
 0x337   : > { %s937_s7 = scalar_lea.sflag [#allocation9], %s936_s8 }
 0x338   : > { %1505 = dma.done.wait (!%p1253_p13), %s937_s7, 256  }
 0x339   : > { %1507 = vsyncadd (!%p1253_p13), %s937_s7, 4294967040  ;;  %s27_s26 = sadd.s32 1, %s1530_s26   ;;  %s1971_s21 = smov %s1514_s22 }
 0x33a   : > { %p24_p10 = scmp.ge.s32.totalorder %s27_s26, 4   ;;  %s1972_s22 = smov %s1518_s23 }
 0x33b   : > { %s1973_s23 = smov %s1682_s18  ;;  %s1974_s24 = smov %s1526_s25 }
 0x33c   : > { %s1975_s25 = smov %s1977_s11  ;;  %26 = sbr.rel (!%p24_p10) target bundleno = 11 (0xb), region = 117 }
 0x343   :  { %951 = vsyncpa [#allocation3], 1 }
 0x344   :  { %953 = vsyncpa [#allocation3 + $0x1], 1 }
 0x345   :  { %954 = vsyncpa [#allocation6], 1 }
 0x346   :  { %955 = vsyncpa [#allocation4], 1 }
 0x347   :  { %957 = vsyncpa [#allocation4 + $0x1], 1 }
 0x348   :  { %958 = vsyncpa [#allocation9], 1 }
 0x349   :  { %960 = vsyncpa [#allocation9 + $0x1], 1 }

// kernel: tpu_custom_call.1
= control target key start
LH: loop header
LB: loop body
LE: loop exit
PB: predicated region body
PF: predicated region fallthrough
CT: control target
= control target key end

     0   :  { %s1943_s0 = inlined_call_operand.hbm [shape: f32[2,8,32], index: 0, kind: input, shape index: {}]   ;;  %s1944_s1 = inlined_call_operand.hbm [shape: f32[32,96], index: 1, kind: input, shape index: {}]   ;;  %s1945_s2 = inlined_call_operand.vmem [shape: f32[1,32], index: 2, kind: input, shape index: {}]   ;;  %s1946_s3 = inlined_call_operand.vmem [shape: f32[1,32], index: 3, kind: input, shape index: {}]   ;;  %s1947_s4 = inlined_call_operand.hbm [shape: f32[2,8,32], index: 4, kind: output, shape index: {0}]   ;;  %s1948_s5 = inlined_call_operand.hbm [shape: f32[2,8,32], index: 5, kind: output, shape index: {1}]   ;;  %s1949_s6 = inlined_call_operand.hbm [shape: f32[2,8,32], index: 6, kind: output, shape index: {2}]  }
   0x1   :  { %1954 = sst [smem:[#allocation15_spill]] %s1944_s1 }
   0x2   :  { %12 = vsyncpa [#allocation3], 0 }
   0x3   :  { %14 = vsyncpa [#allocation3 + $0x1], 0 }
   0x4   :  { %15 = vsyncpa [#allocation6], 0 }
   0x5   :  { %16 = vsyncpa [#allocation4], 0 }
   0x6   :  { %18 = vsyncpa [#allocation4 + $0x1], 0 }
   0x7   :  { %19 = vsyncpa [#allocation9], 0 }
   0x8   :  { %21 = vsyncpa [#allocation9 + $0x1], 0  ;;  %s1579_s21 = smov 0   ;;  %s1581_s22 = smov 0  }
   0x9   :  { %s1583_s23 = smov 0   ;;  %s1585_s24 = smov 0  }
   0xa   :  { %s1587_s25 = smov 0   ;;  %s1589_s26 = smov 0  }
   0xb LB: > { %s1610_s27 = sadd.s32 4294967295, %s1530_s26   ;;  %s1953_s28 = sadd.s32 4294967294, %s1530_s26   ;;  %s1530_s26 = sphi %s1589_s26, %s27_s26   ;;  %s1526_s25 = sphi %s1587_s25, %s1975_s25   ;;  %s1522_s24 = sphi %s1585_s24, %s1974_s24   ;;  %s1518_s23 = sphi %s1583_s23, %s1973_s23   ;;  %s1514_s22 = sphi %s1581_s22, %s1972_s22   ;;  %s1510_s21 = sphi %s1579_s21, %s1971_s21  }
   0xc   : > { %p61_p0 = scmp.ne.s32.totalorder %s1514_s22, %s1510_s21  ;;  %p1950_p1 = scmp.eq.s32.totalorder %s1610_s27, 0 }
   0xd   : > { %p156_p3 = scmp.eq.s32.totalorder %s1953_s28, 1  ;;  %p1070_p5 = scmp.ge.s32.totalorder %s1530_s26, 1 }
   0xe   : > { %p1621_p4 = por %p1950_p1, %p61_p0  ;;  %p219_p7 = scmp.lt.s32.totalorder %s1530_s26, 3 }
   0xf   : > { %p1626_p6 = por %p156_p3, %p61_p0  ;;  %s1532_s8 = smov [#allocation5]  }
  0x10   : > { %s1955_s29 = scalar_select %p1621_p4, 1, 0 }
  0x11   : > { %s1956_s30 = scalar_select %p1626_p6, 1, 0 }
  0x12   : > { %p1631_p8 = pnand %p1070_p5, %p219_p7  ;;  %s231_s9 = sshll.u32 %s1532_s8, 4  ;;  %s232_s9 = int_to_ptr.vmem [resolvable:$true] %s231_s9 }
  0x13   : > { %s39_s11 = sadd.s32 1, %s1526_s25  ;;  %s1959_s1 = sld [smem:[#allocation15_spill]] }
  0x14   : > { %s1957_s7 = scalar_select %p1631_p8, 1, 0 }
  0x15   : > { %p1244_p9 = pneg %p1631_p8 }
  0x17   : > { %p1640_p11 = pnand %p1244_p9, %p1950_p1 }
  0x19   : > { %s1326_s14 = scalar_lea.hbm %s1959_s1, 512  ;;  %p1328_p13 = pneg %p1640_p11 }
  0x1a   : > { %p1327_p12 = scmp.ne.s32.totalorder %s1959_s1, %s1326_s14  ;;  %p1333_p5 = scmp.lt.u32.totalorder %s1326_s14, %s1959_s1 }
  0x1c   : > { %p1329_p0 = pnand %p1328_p13, %p1327_p12 }
  0x1e   : > { %p1330_p3 = pneg %p1329_p0 }
  0x20   : > { %p1335_p7 = pnand %p1333_p5, %p1330_p3 }
  0x22   : > { %1338 = shalt.err (!%p1335_p7)
}
  0x23   : > { %s1339_s19 = scalar_lea.vmem %s232_s9, 512  ;;  %p1347_p2 = scmp.lt.s32.totalorder %s232_s9, %s232_s9 }
  0x24   : > { %p1340_p9 = scmp.ne.s32.totalorder %s232_s9, %s1339_s19  ;;  %p1348_p6 = scmp.lt.s32.totalorder %s1339_s19, %s1339_s19 }
  0x26   : > { %p1342_p10 = pnand %p1340_p9, %p1328_p13  ;;  %p1349_p4 = por %p1348_p6, %p1347_p2 }
  0x28   : > { %p1343_p1 = pneg %p1342_p10 }
  0x2a   : > { %p1350_p8 = pnand %p1349_p4, %p1343_p1 }
  0x2c   : > { %1353 = shalt.err (!%p1350_p8)
}
  0x2d   : > { %s1533_s20 = smov 128   ;;  %s1534_s8 = smov 8  }
  0x2e   : > { %1247 = dma.hbm_to_vmem [thread:$0]  (!%p1640_p11), %s1959_s1, 512, %s232_s9, [#allocation6], %s1533_s20, %s1533_s20, %s1534_s8  }
  0x2f   : > { %p41_p1 = scmp.ge.s32.totalorder %s39_s11, 2  ;;  %s48_s14 = sadd.s32 1, %s1518_s23 }
  0x30   : > { %p55_p2 = scmp.ne.s32.totalorder %s1518_s23, %s1514_s22  ;;  %p56_p4 = scmp.eq.s32.totalorder %s1530_s26, 0 }
  0x31   : > { %s1977_s11 = smov (%p41_p1, %s39_s11), 0  ;;  %p1961_p8 = scmp.eq.s32.totalorder %s1610_s27, 1 }
  0x32   : > { %p1667_p6 = por %p56_p4, %p55_p2  ;;  %s43_s10 = ssub.s32 %s1526_s25, %s1977_s11 }
  0x33   : > { %p1673_p10 = por %p1961_p8, %p55_p2  ;;  %p1263_p12 = scmp.lt.s32.totalorder %s1530_s26, 2 }
  0x34   : > { %p46_p11 = scmp.eq.s32.totalorder %s43_s10, 0  ;;  %s251_s9 = sand.u32 1, %s1518_s23  }
  0x35   : > { %s1073_s17 = sshll.u32 %s251_s9, 3  ;;  %s1074_s19 = sshll.u32 %s1526_s25, 7 }
  0x36   : > { %s1682_s18 = scalar_select %p46_p11, %s1518_s23, %s48_s14  }
  0x37   : > { %s1688_s12 = scalar_lea.hbm %s1943_s0, %s1074_s19  ;;  %s255_s13 = scalar_lea.vmem [#allocation2], %s1073_s17 }
  0x38   : > { %s263_s28 = sshll.u32 %s255_s13, 4  ;;  %p1694_p13 = pnand %p1263_p12, %p1667_p6  ;;  %s1690_s28 = int_to_ptr.vmem [resolvable:$true] %s263_s28 }
  0x39   : > { %s252_s14 = scalar_lea.sflag [#allocation3], %s251_s9  ;;  %s1354_s1 = scalar_lea.hbm %s1688_s12, 128 }
  0x3a   : > { %p1355_p0 = scmp.ne.s32.totalorder %s1688_s12, %s1354_s1  ;;  %p1356_p3 = pneg %p1694_p13 }
  0x3b   : > { %s1359_s20 = scalar_lea.hbm %s1943_s0, 256  ;;  %p1360_p9 = scmp.lt.u32.totalorder %s1688_s12, %s1943_s0 }
  0x3c   : > { %p1357_p5 = pnand %p1356_p3, %p1355_p0  ;;  %p1361_p1 = scmp.lt.u32.totalorder %s1359_s20, %s1354_s1 }
  0x3d   : > { %p1363_p4 = scmp.lt.u32.totalorder %s1354_s1, %s1688_s12 }
  0x3e   : > { %p1358_p7 = pneg %p1357_p5  ;;  %p1362_p2 = por %p1361_p1, %p1360_p9 }
  0x40   : > { %p1364_p6 = por %p1363_p4, %p1362_p2 }
  0x42   : > { %p1365_p8 = pnand %p1364_p6, %p1358_p7 }
  0x44   : > { %1368 = shalt.err (!%p1365_p8)
}
  0x45   : > { %s1369_s9 = scalar_lea.vmem %s1690_s28, 128  ;;  %s1535_s13 = smov [#allocation2]  }
  0x46   : > { %p1370_p12 = scmp.ne.s32.totalorder %s1690_s28, %s1369_s9  ;;  %s1374_s17 = sshll.u32 %s1535_s13, 4  ;;  %s1375_s17 = int_to_ptr.vmem [resolvable:$false] %s1374_s17 }
  0x47   : > { %s1376_s19 = scalar_lea.vmem %s1375_s17, 256  ;;  %p1377_p5 = scmp.lt.s32.totalorder %s1690_s28, %s1375_s17 }
  0x48   : > { %p1372_p11 = pnand %p1370_p12, %p1356_p3  ;;  %p1378_p9 = scmp.lt.s32.totalorder %s1376_s19, %s1369_s9 }
  0x4a   : > { %p1373_p0 = pneg %p1372_p11  ;;  %p1379_p1 = por %p1378_p9, %p1377_p5 }
  0x4c   : > { %p1380_p2 = pnand %p1379_p1, %p1373_p0 }
  0x4e   : > { %1383 = shalt.err (!%p1380_p2)
}
  0x4f   : > { %1251 = dma.hbm_to_vmem [thread:$0]  (!%p1694_p13), %s1688_s12, 128, %s1690_s28, %s252_s14  }
  0x50   : > { %p1964_p7 = scmp.ne.s32.totalorder %s1957_s7, 0 }
  0x51   : > { %s1726_s1 = sand.u32 (!%p1964_p7), 1, %s1514_s22   ;;  %p1965_p3 = scmp.ne.s32.totalorder (!%p1964_p7), %s1955_s29, 0 }
  0x52   : > { %272 = sbr.rel (%p1964_p7) target bundleno = 815 (0x32f), region = 36  ;;  %s1729_s20 = sshll.u32 (!%p1964_p7), %s1726_s1, 3 }
  0x53   : > { %s275_s15 = scalar_lea.sflag (!%p1964_p7), [#allocation3], %s1726_s1  ;;  %s278_s8 = scalar_lea.vmem (!%p1964_p7), [#allocation2], %s1729_s20 }
  0x59   : > { %1493 = dma.done.wait (%p1965_p3), %s275_s15, 128  }
  0x5a   : > { %1495 = vsyncadd (%p1965_p3), %s275_s15, 4294967168  ;;  %p1966_p13 = scmp.eq.s32.totalorder %s1610_s27, 0 }
  0x5c   : > { %1497 = dma.done.wait (%p1966_p13), [#allocation6], 512   ;;  %p1967_p4 = pmov %p1966_p13 }
  0x5d   : > { %vm324_vm0 = vcmask 261120   ;;  %v321_v0 = vld [vmem:[%s278_s8] sm:$0xff]  ;;  %v360_v7 = vld [vmem:[#allocation5] sm:$0xff]  ;;  %v361_v8 = vld [vmem:[#allocation5 + $0x8] sm:$0xff]  ;;  %v1536_v10 = vmov 0.0|0.0   ;;  %vm1537_vm1 = vmmov 0  }
  0x5e   : > { %1499 = vsyncadd (%p1967_p4), [#allocation6], 4294966784  ;;  %v325_v1 = vsel %vm324_vm0, %v321_v0, 0.0  ;;  %v362_v9 = vld [vmem:[#allocation5 + $0x10] sm:$0xff]  ;;  %1205 = vmatprep.subr.bf16.mxu0 %v1536_v10  ;;  %v368_v11 = vand.u32 4294901760, %v360_v7  ;;  %v371_v12 = vand.u32 4294901760, %v361_v8  ;;  %1187 = vmatprep.subr.bf16.mxu1 %v1536_v10 }
  0x5f   : > { %326 = vadd.xlane.f32.xlu0 %v325_v1  ;;  %v363_v13 = vld [vmem:[#allocation5 + $0x18] sm:$0xff]  ;;  %v374_v14 = vand.u32 4294901760, %v362_v9  ;;  %v1538_v16 = vmov 0.0   ;;  %v1081_v50 = vld [vmem:[%s1945_s2] ss:$0 sm:$0xff]  ;;  %s1810_s10 = sshll.u32 %s1522_s24, 7 }
  0x60   : > { %v377_v15 = vand.u32 4294901760, %v363_v13  ;;  %1162 = vmatprep.mubr.msk.f32.mxu0 %vm1537_vm1, %v1538_v16  ;;  %1129 = vmatprep.mubr.msk.f32.mxu1 %vm1537_vm1, %v1538_v16  ;;  %v1753_v17 = vpack.c.bf16 %v371_v12, %v368_v11  ;;  %v1755_v18 = vsub.f32 %v360_v7, %v368_v11  ;;  %v1757_v19 = vsub.f32 %v361_v8, %v371_v12  ;;  %v1082_v52 = vld [vmem:[%s1946_s3] ss:$0 sm:$0xff]  ;;  %s306_s14 = scalar_lea.vmem [#allocation7], %s1729_s20  ;;  %s1817_s19 = scalar_lea.hbm %s1947_s4, %s1810_s10 }
  0x61   : > { %v1759_v20 = vsub.f32 %v362_v9, %v374_v14  ;;  %s887_s9 = sshll.u32 %s306_s14, 4  ;;  %s1539_s15 = smov 96   ;;  %s1819_s9 = int_to_ptr.vmem [resolvable:$true] %s887_s9 }
  0x62   : > { %v1761_v21 = vsub.f32 %v363_v13, %v377_v15  ;;  %1207 = vmatpush3.bf16.msra.mxu0 %v1753_v17  ;;  %1189 = vmatpush3.bf16.msra.mxu1 %v1753_v17  ;;  %v1765_v22 = vpack.c.bf16 %v377_v15, %v374_v14  ;;  %v449_v23 = vand.u32 4294901760, %v1755_v18  ;;  %v456_v24 = vand.u32 4294901760, %v1757_v19  ;;  %s863_s24 = scalar_lea.sflag [#allocation4], %s1726_s1  ;;  %s1384_s8 = scalar_lea.vmem %s1819_s9, 128 }
  0x63   : > { %1208 = vmatprep.subr.bf16.mxu0 %v1536_v10  ;;  %1190 = vmatprep.subr.bf16.mxu1 %v1536_v10  ;;  %v463_v30 = vand.u32 4294901760, %v1759_v20  ;;  %v1200_v39 = vpack.c.bf16 %v1757_v19, %v1755_v18  ;;  %p1385_p6 = scmp.ne.s32.totalorder %s1819_s9, %s1384_s8  ;;  %s1540_s28 = smov [#allocation7]  }
  0x64   : > { %v1212_v25 = vpack.c.bf16 %v456_v24, %v449_v23  ;;  %v450_v26 = vsub.f32 %v1755_v18, %v449_v23  ;;  %v457_v27 = vsub.f32 %v1757_v19, %v456_v24  ;;  %v470_v31 = vand.u32 4294901760, %v1761_v21  ;;  %s1388_s29 = sshll.u32 %s1540_s28, 4  ;;  %s1389_s29 = int_to_ptr.vmem [resolvable:$false] %s1388_s29 }
  0x65   : > { %v464_v34 = vsub.f32 %v1759_v20, %v463_v30  ;;  %v1203_v40 = vpack.c.bf16 %v1761_v21, %v1759_v20  ;;  %p1386_p8 = pnand %p1385_p6, %p1673_p10  ;;  %s1390_s7 = scalar_lea.vmem %s1389_s29, 256 }
  0x66   : > { %1210 = vmatpush3.bf16.msra.mxu0 %v1765_v22  ;;  %1192 = vmatpush3.bf16.msra.mxu1 %v1765_v22  ;;  %v451_v28 = vand.u32 4294901760, %v450_v26  ;;  %v458_v29 = vand.u32 4294901760, %v457_v27  ;;  %v1215_v33 = vpack.c.bf16 %v470_v31, %v463_v30  ;;  %v471_v35 = vsub.f32 %v1761_v21, %v470_v31  ;;  %p1391_p11 = scmp.lt.s32.totalorder %s1819_s9, %s1389_s29  ;;  %p1392_p0 = scmp.lt.s32.totalorder %s1390_s7, %s1384_s8 }
  0x67   : > { %1211 = vmatprep.subr.bf16.mxu0 %v1536_v10  ;;  %1193 = vmatprep.subr.bf16.mxu1 %v1536_v10  ;;  %v465_v36 = vand.u32 4294901760, %v464_v34  ;;  %p1387_p12 = pneg %p1386_p8 }
  0x68   : > { %v1194_v32 = vpack.c.bf16 %v458_v29, %v451_v28  ;;  %v472_v37 = vand.u32 4294901760, %v471_v35  ;;  %p1393_p5 = por %p1392_p0, %p1391_p11 }
  0x6a   : > { %v1197_v38 = vpack.c.bf16 %v472_v37, %v465_v36  ;;  %p1394_p9 = pnand %p1393_p5, %p1387_p12 }
  0xec   : > { %v327_v2 = vpop.xlane.xlu0 %326 }
  0xed   : > { %v329_v3 = vmul.f32 0.03125, %v327_v2 }
  0xef   : > { %v1742_v4 = vsub.f32 %v321_v0, %v329_v3 }
  0xf1   : > { %v331_v5 = vmul.f32 %v1742_v4, %v1742_v4 }
  0xf3   : > { %v332_v6 = vsel %vm324_vm0, %v331_v5, 0.0 }
  0xf4   : > { %333 = vadd.xlane.f32.xlu0 %v332_v6 }
 0x181   : > { %v334_v41 = vpop.xlane.xlu0 %333 }
 0x182   : > { %v335_v42 = vmul.f32 0.03125, %v334_v41 }
 0x184   : > { %v336_v43 = vadd.f32 1e-05, %v335_v42 }
 0x186   : > { %1322 = vrsqrt.f32 %v336_v43  ;;  %vm339_vm2 = vcmp.eq.f32.partialorder %v336_v43, inf  ;;  %v342_v46 = vand.u32 2147483648, %v336_v43  ;;  %vm341_vm3 = vcmp.eq.f32.partialorder %v336_v43, 0.0 }
 0x190   : > { %v1323_v44 = vpop.eup %1322 }
 0x191   : > { %v338_v45 = vmul.f32 %v1323_v44, %v336_v43 }
 0x193   : > { %v340_v47 = vsel %vm339_vm2, %v336_v43, %v338_v45 }
 0x194   : > { %v343_v48 = vsel %vm341_vm3, %v342_v46, %v340_v47 }
 0x195   : > { %1324 = vrcp.f32 %v343_v48 }
 0x19f   : > { %v1325_v49 = vpop.eup %1324 }
 0x1a0   : > { %v345_v51 = vmul.f32 %v1325_v49, %v1742_v4 }
 0x1a2   : > { %v352_v53 = vmul.f32 %v1081_v50, %v345_v51 }
 0x1a4   : > { %v359_v54 = vadd.f32 %v1082_v52, %v352_v53 }
 0x1a6   : > { %v365_v55 = vsel %vm324_vm0, %v359_v54, 0 }
 0x1a7   : > { %v436_v56 = vand.u32 4294901760, %v365_v55 }
 0x1a9   : > { %v437_v57 = vsub.f32 %v365_v55, %v436_v56 }
 0x1ab   : > { %v438_v58 = vand.u32 4294901760, %v437_v57 }
 0x1ad   : > { %1163 = vmatmul.mubr.f32.vlgmr.msra.gmra.mrb[0].mxu0 %v438_v58  ;;  %v439_v59 = vsub.f32 %v437_v57, %v438_v58 }
 0x1ae   : > { %1213 = vmatpush3.bf16.msra.mxu0 %v1212_v25  ;;  %1173 = vmatprep.mubr.msk.f32.mxu0 %vm1537_vm1, %v1538_v16 }
 0x1af   : > { %v440_v60 = vand.u32 4294901760, %v439_v59  ;;  %1214 = vmatprep.subr.bf16.mxu0 %v1536_v10 }
 0x1b1   : > { %1130 = vmatmul.mubr.f32.vlgmr.msra.gmra.mrb[0].mxu1 %v440_v60 }
 0x1b2   : > { %1195 = vmatpush3.bf16.msra.mxu1 %v1194_v32  ;;  %1216 = vmatpush3.bf16.msra.mxu0 %v1215_v33 }
 0x1b3   : > { %1196 = vmatprep.subr.bf16.mxu1 %v1536_v10  ;;  %1217 = vmatprep.subr.bf16.mxu0 %v1536_v10 }
 0x1b4   : > { %1140 = vmatprep.mubr.msk.f32.mxu1 %vm1537_vm1, %v1538_v16 }
 0x1b5   : > { %1174 = vmatmul.mubr.f32.vlgmr.msra.gmra.mrb[0].mxu0 %v436_v56 }
 0x1b6   : > { %1198 = vmatpush3.bf16.msra.mxu1 %v1197_v38  ;;  %1219 = vmatpush3.bf16.msra.mxu0 %v1753_v17 }
 0x1b7   : > { %1199 = vmatprep.subr.bf16.mxu1 %v1536_v10  ;;  %1220 = vmatprep.subr.bf16.mxu0 %v1536_v10 }
 0x1b8   : > { %1184 = vmatprep.mubr.msk.f32.mxu0 %vm1537_vm1, %v1538_v16 }
 0x1b9   : > { %1141 = vmatmul.mubr.f32.vlgmr.msra.gmra.mrb[0].mxu1 %v436_v56 }
 0x1ba   : > { %1201 = vmatpush3.bf16.msra.mxu1 %v1200_v39  ;;  %1222 = vmatpush3.bf16.msra.mxu0 %v1765_v22 }
 0x1bb   : > { %1202 = vmatprep.subr.bf16.mxu1 %v1536_v10  ;;  %1151 = vmatprep.mubr.msk.f32.mxu1 %vm1537_vm1, %v1538_v16 }
 0x1bd   : > { %1185 = vmatmul.mubr.f32.vlgmr.msra.gmra.mrb[0].mxu0 %v436_v56 }
 0x1be   : > { %1204 = vmatpush3.bf16.msra.mxu1 %v1203_v40 }
 0x1c1   : > { %1152 = vmatmul.mubr.f32.vlgmr.msra.gmra.mrb[0].mxu1 %v437_v57 }
 0x290   : > { %v848_v61 = vpop.f32.mrb[0].mxu0 }
 0x291   : > { %v1186_v62 = vpop.f32.mrb[1].mxu0 }
 0x294   : > { %v613_v63 = vpop.f32.mrb[0].mxu1 }
 0x295   : > { %v1223_v0 = vadd.f32 %v848_v61, %v613_v63  ;;  %v1153_v1 = vpop.f32.mrb[1].mxu1 }
 0x297   : > { %854 = vrot.lane.b32.xlu1 %v1223_v0, %s1539_s15  ;;  %852 = vst.msk [vmem:[%s306_s14] sm:$0xff] %vm324_vm0, %v1223_v0 }
 0x298   : > { %1397 = shalt.err (!%p1394_p9)
}
 0x299   : > { %s1398_s1 = scalar_lea.hbm %s1817_s19, 128  ;;  %s1402_s13 = scalar_lea.hbm %s1947_s4, 256 }
 0x29a   : > { %p1399_p1 = scmp.ne.s32.totalorder %s1817_s19, %s1398_s1  ;;  %p1403_p3 = scmp.lt.u32.totalorder %s1817_s19, %s1947_s4 }
 0x29b   : > { %p1404_p13 = scmp.lt.u32.totalorder %s1402_s13, %s1398_s1  ;;  %p1406_p6 = scmp.lt.u32.totalorder %s1398_s1, %s1817_s19 }
 0x29c   : > { %p1400_p2 = pnand %p1399_p1, %p1673_p10 }
 0x29d   : > { %p1405_p4 = por %p1404_p13, %p1403_p3 }
 0x29e   : > { %p1401_p7 = pneg %p1400_p2 }
 0x29f   : > { %p1407_p8 = por %p1406_p6, %p1405_p4 }
 0x2a1   : > { %p1408_p12 = pnand %p1407_p8, %p1401_p7 }
 0x2a3   : > { %1411 = shalt.err (!%p1408_p12)
}
 0x2a4   : > { %1238 = dma.vmem_to_hbm [thread:$0]  (%p1673_p10), %s1819_s9, 128, %s1817_s19, %s863_s24  }
 0x2a5   : > { %s1541_s8 = smov 64   ;;  %s867_s28 = sand.u32 1, %s1610_s27  }
 0x2a6   : > { %858 = vrot.lane.b32.xlu1 %v1223_v0, %s1541_s8  ;;  %s313_s29 = scalar_lea.vmem [#allocation8], %s1729_s20  ;;  %s1850_s14 = scalar_lea.hbm %s1948_s5, %s1810_s10 }
 0x2a7   : > { %s901_s7 = sshll.u32 %s313_s29, 4  ;;  %s320_s13 = scalar_lea.vmem [#allocation10], %s1729_s20  ;;  %s1852_s7 = int_to_ptr.vmem [resolvable:$true] %s901_s7 }
 0x2a8   : > { %s1857_s17 = sshll.u32 %s320_s13, 4  ;;  %s1860_s27 = scalar_lea.sflag [#allocation9], %s867_s28  ;;  %s1891_s17 = int_to_ptr.vmem [resolvable:$true] %s1857_s17 }
 0x2a9   : > { %s1412_s9 = scalar_lea.vmem %s1852_s7, 128  ;;  %s1542_s19 = smov [#allocation8]  }
 0x2aa   : > { %p1413_p11 = scmp.ne.s32.totalorder %s1852_s7, %s1412_s9  ;;  %s1416_s24 = sshll.u32 %s1542_s19, 4  ;;  %s1417_s24 = int_to_ptr.vmem [resolvable:$false] %s1416_s24 }
 0x2ab   : > { %s1418_s15 = scalar_lea.vmem %s1417_s24, 256  ;;  %p1419_p9 = scmp.lt.s32.totalorder %s1852_s7, %s1417_s24 }
 0x2ac   : > { %p1414_p0 = pnand %p1413_p11, %p1673_p10  ;;  %p1420_p1 = scmp.lt.s32.totalorder %s1418_s15, %s1412_s9 }
 0x2ae   : > { %p1415_p5 = pneg %p1414_p0  ;;  %p1421_p2 = por %p1420_p1, %p1419_p9 }
 0x2b0   : > { %p1422_p7 = pnand %p1421_p2, %p1415_p5 }
 0x309   : > { %v855_v2 = vpop.permute.xlu1 %854 }
 0x30a   : > { %857 = vst.msk [vmem:[%s313_s29] sm:$0xff] %vm324_vm0, %v855_v2 }
 0x30b   : > { %1425 = shalt.err (!%p1422_p7)
}
 0x30c   : > { %s1426_s8 = scalar_lea.hbm %s1850_s14, 128  ;;  %s1430_s1 = scalar_lea.hbm %s1948_s5, 256 }
 0x30d   : > { %p1427_p3 = scmp.ne.s32.totalorder %s1850_s14, %s1426_s8  ;;  %p1431_p6 = scmp.lt.u32.totalorder %s1850_s14, %s1948_s5 }
 0x30e   : > { %p1432_p8 = scmp.lt.u32.totalorder %s1430_s1, %s1426_s8  ;;  %p1434_p11 = scmp.lt.u32.totalorder %s1426_s8, %s1850_s14 }
 0x30f   : > { %p1428_p13 = pnand %p1427_p3, %p1673_p10 }
 0x310   : > { %p1433_p12 = por %p1432_p8, %p1431_p6 }
 0x311   : > { %p1429_p4 = pneg %p1428_p13 }
 0x312   : > { %p1435_p0 = por %p1434_p11, %p1433_p12 }
 0x314   : > { %p1436_p5 = pnand %p1435_p0, %p1429_p4 }
 0x316   : > { %1439 = shalt.err (!%p1436_p5)
}
 0x317   : > { %1239 = dma.vmem_to_hbm [thread:$0]  (%p1673_p10), %s1852_s7, 128, %s1850_s14, %s1860_s27  }
 0x318   : > { %s1888_s15 = scalar_lea.hbm %s1949_s6, %s1810_s10  ;;  %v859_v3 = vpop.permute.xlu1 %858  ;;  %s1440_s8 = scalar_lea.vmem %s1891_s17, 128 }
 0x319   : > { %861 = vst.msk [vmem:[%s320_s13] sm:$0xff] %vm324_vm0, %v859_v3  ;;  %p1441_p9 = scmp.ne.s32.totalorder %s1891_s17, %s1440_s8  ;;  %s1543_s7 = smov [#allocation10]  }
 0x31a   : > { %s1444_s14 = sshll.u32 %s1543_s7, 4  ;;  %s1445_s14 = int_to_ptr.vmem [resolvable:$false] %s1444_s14 }
 0x31b   : > { %p1442_p1 = pnand %p1441_p9, %p1673_p10  ;;  %s1446_s28 = scalar_lea.vmem %s1445_s14, 256 }
 0x31c   : > { %p1447_p7 = scmp.lt.s32.totalorder %s1891_s17, %s1445_s14  ;;  %p1448_p3 = scmp.lt.s32.totalorder %s1446_s28, %s1440_s8 }
 0x31d   : > { %p1443_p2 = pneg %p1442_p1 }
 0x31e   : > { %p1449_p13 = por %p1448_p3, %p1447_p7 }
 0x320   : > { %p1450_p4 = pnand %p1449_p13, %p1443_p2 }
 0x322   : > { %1453 = shalt.err (!%p1450_p4)
}
 0x323   : > { %s1454_s20 = scalar_lea.hbm %s1888_s15, 128  ;;  %s1458_s29 = scalar_lea.hbm %s1949_s6, 256 }
 0x324   : > { %p1455_p6 = scmp.ne.s32.totalorder %s1888_s15, %s1454_s20  ;;  %p1459_p11 = scmp.lt.u32.totalorder %s1888_s15, %s1949_s6 }
 0x325   : > { %p1460_p0 = scmp.lt.u32.totalorder %s1458_s29, %s1454_s20  ;;  %p1462_p9 = scmp.lt.u32.totalorder %s1454_s20, %s1888_s15 }
 0x326   : > { %p1456_p8 = pnand %p1455_p6, %p1673_p10 }
 0x327   : > { %p1461_p5 = por %p1460_p0, %p1459_p11 }
 0x328   : > { %p1457_p12 = pneg %p1456_p8 }
 0x329   : > { %p1463_p1 = por %p1462_p9, %p1461_p5 }
 0x32b   : > { %p1464_p2 = pnand %p1463_p1, %p1457_p12 }
 0x32d   : > { %1467 = shalt.err (!%p1464_p2)
}
 0x32e   : > { %1240 = dma.vmem_to_hbm [thread:$0]  (%p1673_p10), %s1891_s17, 128, %s1888_s15, %s1860_s27  }
 0x32f PF: > { %s927_s19 = sand.u32 1, %s1510_s21   ;;  %p1968_p7 = scmp.ne.s32.totalorder %s1956_s30, 0 }
 0x330   : > { %p1969_p3 = scmp.ge.s32.totalorder %s1530_s26, 2  ;;  %s928_s9 = scalar_lea.sflag [#allocation4], %s927_s19 }
 0x332   : > { %p1253_p13 = pnand %p1969_p3, %p1968_p7 }
 0x334   : > { %1501 = dma.done.wait (!%p1253_p13), %s928_s9, 128  }
 0x335   : > { %1503 = vsyncadd (!%p1253_p13), %s928_s9, 4294967168  ;;  %s1970_s24 = sadd.s32 4294967294, %s1530_s26  }
 0x336   : > { %s936_s8 = sand.u32 1, %s1970_s24  }
 0x337   : > { %s937_s7 = scalar_lea.sflag [#allocation9], %s936_s8 }
 0x338   : > { %1505 = dma.done.wait (!%p1253_p13), %s937_s7, 256  }
 0x339   : > { %1507 = vsyncadd (!%p1253_p13), %s937_s7, 4294967040  ;;  %s27_s26 = sadd.s32 1, %s1530_s26   ;;  %s1971_s21 = smov %s1514_s22 }
 0x33a   : > { %p24_p10 = scmp.ge.s32.totalorder %s27_s26, 4   ;;  %s1972_s22 = smov %s1518_s23 }
 0x33b   : > { %s1973_s23 = smov %s1682_s18  ;;  %s1974_s24 = smov %s1526_s25 }
 0x33c   : > { %s1975_s25 = smov %s1977_s11  ;;  %26 = sbr.rel (!%p24_p10) target bundleno = 11 (0xb), region = 117 }
 0x343   :  { %951 = vsyncpa [#allocation3], 1 }
 0x344   :  { %953 = vsyncpa [#allocation3 + $0x1], 1 }
 0x345   :  { %954 = vsyncpa [#allocation6], 1 }
 0x346   :  { %955 = vsyncpa [#allocation4], 1 }
 0x347   :  { %957 = vsyncpa [#allocation4 + $0x1], 1 }
 0x348   :  { %958 = vsyncpa [#allocation9], 1 }
 0x349   :  { %960 = vsyncpa [#allocation9 + $0x1], 1 }

</bundles_post_ra>
